<compile_context>
chip_gen: v7x
topology: tpu7x:2x2x1
jax: 0.10.0
libtpu: 0.0.40
codegen_flags: <defaults>
</compile_context>

<pallas_src>
import math

import jax
import jax.numpy as jnp
from jax.experimental import pallas as pl
from jax.experimental.pallas import tpu as pltpu

# -------------------- scaled-down BERT config --------------------
VOCAB = 64
MAX_POS = 16
TYPE_VOCAB = 2
HIDDEN = 32          # stands in for 768
N_LAYERS = 2
N_HEADS = 4
HEAD_DIM = HIDDEN // N_HEADS
INTERMEDIATE = 64    # stands in for 3072
LN_EPS = 1e-12
MASK_BIAS = -10000.0
ATTN_SCALE = 1.0 / math.sqrt(HEAD_DIM)


# -------------------- in-kernel helpers (traced inside Pallas bodies) --------------------
def _layernorm_val(h, g, b):
    mu = jnp.mean(h, axis=-1, keepdims=True)
    var = jnp.mean(jnp.square(h - mu), axis=-1, keepdims=True)
    return (h - mu) * jax.lax.rsqrt(var + LN_EPS) * g + b


def _gelu(y):
    # TODO(synk): HF BERT uses the exact erf-based GELU; tanh approximation kept
    # for robust Mosaic lowering.
    return 0.5 * y * (1.0 + jnp.tanh(0.7978845608028654 * (y + 0.044715 * y * y * y)))


# -------------------- fused encoder-stack kernel (ONE pallas_call for all layers) --------------------
def _encoder_stack(x_emb, mask_f32, emb_ln_g, emb_ln_b, stack, batch, seq):
    """All N_LAYERS BERT encoder layers in a single pallas_call.

    x_emb    : (B*S, HIDDEN) f32 summed embeddings (pre-LayerNorm)
    mask_f32 : (B, S)        f32 raw attention mask (1 = keep, 0 = pad)
    stack    : dict of per-layer weights stacked along dim 0 (matmul weights bf16)
    """
    BS, H = x_emb.shape
    L = N_LAYERS

    def kernel(m_ref, x_ref, elng_ref, elnb_ref,
               wqkv_ref, bqkv_ref, wo_ref, bo_ref,
               ln1g_ref, ln1b_ref, w1_ref, b1_ref, w2_ref, b2_ref,
               ln2g_ref, ln2b_ref,
               o_ref, ctx_sc):
        l = pl.program_id(0)

        # Fold the embedding LayerNorm into grid step 0; o_ref then acts as the
        # resident activation buffer for the whole layer stack.
        @pl.when(l == 0)
        def _():
            o_ref[...] = _layernorm_val(x_ref[...], elng_ref[...], elnb_ref[...])

        x_f32 = o_ref[...]                                    # (B*S, H) f32
        x_bf = x_f32.astype(jnp.bfloat16)

        # ---- fused Q|K|V projection: one wide matmul, x read once ----
        qkv = jnp.dot(x_bf, wqkv_ref[...],
                      preferred_element_type=jnp.float32) + bqkv_ref[...]   # (B*S, 3H)

        # Mask bias computed + broadcast ONCE per layer (hoisted out of head loop).
        bias_b = ((1.0 - m_ref[...]) * MASK_BIAS)[:, None, :]              # (B, 1, S)

        # ---- per-head attention; context written lane-contiguously into a
        # (B*S, H) VMEM scratch so the output projection is ONE full matmul.
        # TODO(synk): use lax.fori_loop(unroll=True) / fully head-batched
        # contraction once HEAD_DIM and S grow to production sizes.
        for h in range(N_HEADS):
            q3 = qkv[:, h * HEAD_DIM:(h + 1) * HEAD_DIM] \
                .reshape(batch, seq, HEAD_DIM).astype(jnp.bfloat16)
            k3 = qkv[:, H + h * HEAD_DIM:H + (h + 1) * HEAD_DIM] \
                .reshape(batch, seq, HEAD_DIM).astype(jnp.bfloat16)
            v3 = qkv[:, 2 * H + h * HEAD_DIM:2 * H + (h + 1) * HEAD_DIM] \
                .reshape(batch, seq, HEAD_DIM).astype(jnp.bfloat16)

            s = jnp.einsum("bqd,bkd->bqk", q3, k3,
                           preferred_element_type=jnp.float32) * ATTN_SCALE
            s = s + bias_b
            s = s - jnp.max(s, axis=-1, keepdims=True)
            e = jnp.exp(s)
            p = e * pl.reciprocal(jnp.sum(e, axis=-1, keepdims=True), approx=True)

            ctx = jnp.einsum("bqk,bkd->bqd", p.astype(jnp.bfloat16), v3,
                             preferred_element_type=jnp.float32)            # (B, S, D)
            ctx_sc[:, h * HEAD_DIM:(h + 1) * HEAD_DIM] = ctx.reshape(BS, HEAD_DIM)

        # ---- ONE output projection over all heads (replaces N_HEADS tiny matmuls) ----
        attn_out = jnp.dot(ctx_sc[...].astype(jnp.bfloat16), wo_ref[...],
                           preferred_element_type=jnp.float32) + bo_ref[...]

        # ---- residual + LayerNorm 1 ----
        x1 = _layernorm_val(attn_out + x_f32, ln1g_ref[...], ln1b_ref[...])

        # ---- FFN: w1 + GELU + w2 (fused) ----
        h1 = jnp.dot(x1.astype(jnp.bfloat16), w1_ref[...],
                     preferred_element_type=jnp.float32) + b1_ref[...]
        h1 = _gelu(h1)
        ffn = jnp.dot(h1.astype(jnp.bfloat16), w2_ref[...],
                      preferred_element_type=jnp.float32) + b2_ref[...]

        # ---- residual + LayerNorm 2 -> resident activation for next layer ----
        o_ref[...] = _layernorm_val(ffn + x1, ln2g_ref[...], ln2b_ref[...])

    def full(shape):
        # whole-array block, constant across the layer axis (fetched once)
        return pl.BlockSpec(shape, lambda l, _s=shape: (0,) * len(_s))

    def per_layer(shape):
        # per-layer block: leading (stacked) dim squeezed, index selected by l
        return pl.BlockSpec((None,) + shape,
                            lambda l, _s=shape: (l,) + (0,) * len(_s))

    grid_spec = pltpu.PrefetchScalarGridSpec(
        num_scalar_prefetch=0,
        grid=(L,),
        in_specs=[
            full((batch, seq)),                 # mask
            full((BS, H)),                      # summed embeddings
            full((1, H)), full((1, H)),         # embedding LayerNorm gamma/beta
            per_layer((H, 3 * H)),              # wqkv
            per_layer((1, 3 * H)),              # bqkv
            per_layer((H, H)),                  # wo
            per_layer((1, H)),                  # bo
            per_layer((1, H)), per_layer((1, H)),           # ln1 gamma/beta
            per_layer((H, INTERMEDIATE)),       # w1
            per_layer((1, INTERMEDIATE)),       # b1
            per_layer((INTERMEDIATE, H)),       # w2
            per_layer((1, H)),                  # b2
            per_layer((1, H)), per_layer((1, H)),           # ln2 gamma/beta
        ],
        # Same block index for every layer -> activation stays resident in VMEM,
        # written back to HBM only once at the end of the grid.
        out_specs=pl.BlockSpec((BS, H), lambda l: (0, 0)),
        scratch_shapes=[pltpu.VMEM((BS, H), jnp.float32)],   # per-head ctx concat buffer
    )

    return pl.pallas_call(
        kernel,
        out_shape=jax.ShapeDtypeStruct((BS, H), jnp.float32),
        grid_spec=grid_spec,
        compiler_params=pltpu.CompilerParams(
            # Layer axis is a sequential dependency chain.
            dimension_semantics=("arbitrary",),
            vmem_limit_bytes=32 * 1024 * 1024,
        ),
    )(mask_f32, x_emb, emb_ln_g, emb_ln_b,
      stack["wqkv"], stack["bqkv"], stack["wo"], stack["bo"],
      stack["ln1_g"], stack["ln1_b"], stack["w1"], stack["b1"],
      stack["w2"], stack["b2"], stack["ln2_g"], stack["ln2_b"])


# -------------------- fused pooler + classifier kernel --------------------
def _pooler_classifier(x_cls, pool_w, pool_b, cls_w, cls_b):
    """Fused BertPooler (tanh linear on [CLS]) + BERTClass.l2 Linear(hidden, 1)."""
    B, H = x_cls.shape

    def kernel(x_ref, pw_ref, pb_ref, cw_ref, cb_ref, o_ref):
        pooled = jnp.tanh(
            jnp.dot(x_ref[...].astype(jnp.bfloat16), pw_ref[...],
                    preferred_element_type=jnp.float32) + pb_ref[...])
        o_ref[...] = jnp.dot(pooled.astype(jnp.bfloat16), cw_ref[...],
                             preferred_element_type=jnp.float32) + cb_ref[...]

    return pl.pallas_call(
        kernel,
        out_shape=jax.ShapeDtypeStruct((B, 1), jnp.float32),
    )(x_cls, pool_w, pool_b, cls_w, cls_b)


# -------------------- parameters --------------------
def init_params(key):
    state = {"key": key}

    def nrm(shape, dtype=jnp.float32):
        state["key"], sub = jax.random.split(state["key"])
        return (0.02 * jax.random.normal(sub, shape, dtype=jnp.float32)).astype(dtype)

    def zeros(shape):
        return jnp.zeros(shape, jnp.float32)

    def ones(shape):
        return jnp.ones(shape, jnp.float32)

    params = {
        "word_emb": nrm((VOCAB, HIDDEN)),
        "pos_emb": nrm((MAX_POS, HIDDEN)),
        "type_emb": nrm((TYPE_VOCAB, HIDDEN)),
        "emb_ln_g": ones((1, HIDDEN)),
        "emb_ln_b": zeros((1, HIDDEN)),
        # pooler + classifier head (matmul weights stored bf16)
        "pool_w": nrm((HIDDEN, HIDDEN), jnp.bfloat16),
        "pool_b": zeros((1, HIDDEN)),
        "cls_w": nrm((HIDDEN, 1), jnp.bfloat16),
        "cls_b": zeros((1, 1)),
    }

    # Per-layer weights, stacked along a leading layer dim for the layer-grid kernel.
    # TODO(synk): on v7x the large matmul weights could be stored fp8 to halve DMA bytes.
    names = ("wqkv", "bqkv", "wo", "bo", "ln1_g", "ln1_b",
             "w1", "b1", "w2", "b2", "ln2_g", "ln2_b")
    per = {n: [] for n in names}
    for _ in range(N_LAYERS):
        wq = nrm((HIDDEN, HIDDEN))
        wk = nrm((HIDDEN, HIDDEN))
        wv = nrm((HIDDEN, HIDDEN))
        per["wqkv"].append(jnp.concatenate([wq, wk, wv], axis=1).astype(jnp.bfloat16))
        per["bqkv"].append(zeros((1, 3 * HIDDEN)))
        per["wo"].append(nrm((HIDDEN, HIDDEN), jnp.bfloat16))
        per["bo"].append(zeros((1, HIDDEN)))
        per["ln1_g"].append(ones((1, HIDDEN)))
        per["ln1_b"].append(zeros((1, HIDDEN)))
        per["w1"].append(nrm((HIDDEN, INTERMEDIATE), jnp.bfloat16))
        per["b1"].append(zeros((1, INTERMEDIATE)))
        per["w2"].append(nrm((INTERMEDIATE, HIDDEN), jnp.bfloat16))
        per["b2"].append(zeros((1, HIDDEN)))
        per["ln2_g"].append(ones((1, HIDDEN)))
        per["ln2_b"].append(zeros((1, HIDDEN)))
    params["stack"] = {n: jnp.stack(v, axis=0) for n, v in per.items()}
    return params


# -------------------- forward (BERTClass.forward equivalent) --------------------
def bert_classifier_forward(params, ids, mask, token_type_ids):
    B, S = ids.shape
    pos = jnp.arange(S, dtype=jnp.int32)

    # Embedding gathers are plain-JAX glue; everything else runs in 2 pallas_calls.
    emb = (params["word_emb"][ids]
           + params["pos_emb"][pos][None, :, :]
           + params["type_emb"][token_type_ids])
    x_emb = emb.reshape(B * S, HIDDEN)
    mask_f32 = mask.astype(jnp.float32)

    # All encoder layers (+ embedding LayerNorm at grid step 0) in ONE kernel.
    x = _encoder_stack(x_emb, mask_f32,
                       params["emb_ln_g"], params["emb_ln_b"],
                       params["stack"], B, S)

    # BertPooler on the [CLS] row + BERTClass.l2, fused in one kernel.
    cls_tok = x.reshape(B, S, HIDDEN)[:, 0, :]
    logits = _pooler_classifier(cls_tok, params["pool_w"], params["pool_b"],
                                params["cls_w"], params["cls_b"])
    return logits  # (B, 1)


if __name__ == "__main__":
    key = jax.random.PRNGKey(0)
    pkey, ikey, tkey = jax.random.split(key, 3)

    params = init_params(pkey)

    B, S = 2, 8
    ids = jax.random.randint(ikey, (B, S), 0, VOCAB, dtype=jnp.int32)
    token_type_ids = jax.random.randint(tkey, (B, S), 0, TYPE_VOCAB, dtype=jnp.int32)
    mask = jnp.ones((B, S), dtype=jnp.int32)

    out = jax.jit(bert_classifier_forward)(params, ids, mask, token_type_ids)
    out = jax.block_until_ready(out)
    assert out.shape == (B, 1) and out.dtype == jnp.float32
    print("KERNEL_OK")
</pallas_src>

<mosaic_0001>
module attributes {stable_mosaic.version = 11 : i64} {
  func.func @kernel(%arg0: memref<2x32xf32, #tpu.memory_space<vmem>>, %arg1: memref<32x32xbf16, #tpu.memory_space<vmem>>, %arg2: memref<1x32xf32, #tpu.memory_space<vmem>>, %arg3: memref<32x1xbf16, #tpu.memory_space<vmem>>, %arg4: memref<1x1xf32, #tpu.memory_space<vmem>>, %arg5: memref<2x1xf32, #tpu.memory_space<vmem>>) attributes {dimension_semantics = [], scalar_prefetch = 0 : i64, scratch_operands = 0 : i64, tpu.core_type = #tpu.core_type<tc>} {
    %c0 = arith.constant 0 : index
    %c0_0 = arith.constant 0 : index
    %0 = vector.load %arg0[%c0, %c0_0] : memref<2x32xf32, #tpu.memory_space<vmem>>, vector<2x32xf32>
    %1 = arith.truncf %0 : vector<2x32xf32> to vector<2x32xbf16>
    %c0_1 = arith.constant 0 : index
    %c0_2 = arith.constant 0 : index
    %2 = vector.load %arg1[%c0_1, %c0_2] : memref<32x32xbf16, #tpu.memory_space<vmem>>, vector<32x32xbf16>
    %cst = arith.constant dense<0.000000e+00> : vector<2x32xf32>
    %3 = tpu.matmul %1, %2, %cst {dimension_numbers = #tpu.dot_dimension_numbers<[1], [0], [0], [1], [0, 0, 1, 1], [], []>} : vector<2x32xbf16>, vector<32x32xbf16>, vector<2x32xf32> -> vector<2x32xf32>
    %c0_3 = arith.constant 0 : index
    %c0_4 = arith.constant 0 : index
    %4 = vector.load %arg2[%c0_3, %c0_4] : memref<1x32xf32, #tpu.memory_space<vmem>>, vector<1x32xf32>
    %5 = vector.broadcast %4 : vector<1x32xf32> to vector<2x32xf32>
    %6 = arith.addf %3, %5 : vector<2x32xf32>
    %7 = math.tanh %6 : vector<2x32xf32>
    %8 = arith.truncf %7 : vector<2x32xf32> to vector<2x32xbf16>
    %c0_5 = arith.constant 0 : index
    %c0_6 = arith.constant 0 : index
    %9 = vector.load %arg3[%c0_5, %c0_6] : memref<32x1xbf16, #tpu.memory_space<vmem>>, vector<32x1xbf16>
    %cst_7 = arith.constant dense<0.000000e+00> : vector<2x1xf32>
    %10 = tpu.matmul %8, %9, %cst_7 {dimension_numbers = #tpu.dot_dimension_numbers<[1], [0], [0], [1], [0, 0, 1, 1], [], []>} : vector<2x32xbf16>, vector<32x1xbf16>, vector<2x1xf32> -> vector<2x1xf32>
    %c0_8 = arith.constant 0 : index
    %c0_9 = arith.constant 0 : index
    %11 = vector.load %arg4[%c0_8, %c0_9] : memref<1x1xf32, #tpu.memory_space<vmem>>, vector<1x1xf32>
    %12 = vector.broadcast %11 : vector<1x1xf32> to vector<2x1xf32>
    %13 = arith.addf %10, %12 : vector<2x1xf32>
    %c0_10 = arith.constant 0 : index
    %c0_11 = arith.constant 0 : index
    %14 = vector.load %arg5[%c0_10, %c0_11] : memref<2x1xf32, #tpu.memory_space<vmem>>, vector<2x1xf32>
    tpu.vector_store %arg5[%c0_10, %c0_11], %13 {strides = array<i32>} : memref<2x1xf32, #tpu.memory_space<vmem>>, vector<2x1xf32>,
    return
  }
}

module attributes {stable_mosaic.version = 11 : i64} {
  func.func @kernel(%arg0: i32, %arg1: memref<2x8xf32, #tpu.memory_space<vmem>>, %arg2: memref<16x32xf32, #tpu.memory_space<vmem>>, %arg3: memref<1x32xf32, #tpu.memory_space<vmem>>, %arg4: memref<1x32xf32, #tpu.memory_space<vmem>>, %arg5: memref<1x32x96xbf16, #tpu.memory_space<vmem>>, %arg6: memref<1x1x96xf32, #tpu.memory_space<vmem>>, %arg7: memref<1x32x32xbf16, #tpu.memory_space<vmem>>, %arg8: memref<1x1x32xf32, #tpu.memory_space<vmem>>, %arg9: memref<1x1x32xf32, #tpu.memory_space<vmem>>, %arg10: memref<1x1x32xf32, #tpu.memory_space<vmem>>, %arg11: memref<1x32x64xbf16, #tpu.memory_space<vmem>>, %arg12: memref<1x1x64xf32, #tpu.memory_space<vmem>>, %arg13: memref<1x64x32xbf16, #tpu.memory_space<vmem>>, %arg14: memref<1x1x32xf32, #tpu.memory_space<vmem>>, %arg15: memref<1x1x32xf32, #tpu.memory_space<vmem>>, %arg16: memref<1x1x32xf32, #tpu.memory_space<vmem>>, %arg17: memref<16x32xf32, #tpu.memory_space<vmem>>, %arg18: memref<16x32xf32, #tpu.memory_space<vmem>>) attributes {dimension_semantics = [#tpu.dimension_semantics<arbitrary>], iteration_bounds = array<i64: 2>, scalar_prefetch = 0 : i64, scratch_operands = 1 : i64, tpu.core_type = #tpu.core_type<tc>, window_params = [{pipeline_mode = #tpu.pipeline_mode<synchronous>, transform_indices = @transform_0, window_bounds = array<i64: 2, 8>}, {pipeline_mode = #tpu.pipeline_mode<synchronous>, transform_indices = @transform_1, window_bounds = array<i64: 16, 32>}, {pipeline_mode = #tpu.pipeline_mode<synchronous>, transform_indices = @transform_2, window_bounds = array<i64: 1, 32>}, {pipeline_mode = #tpu.pipeline_mode<synchronous>, transform_indices = @transform_3, window_bounds = array<i64: 1, 32>}, {transform_indices = @transform_4, window_bounds = array<i64: 1, 32, 96>}, {transform_indices = @transform_5, window_bounds = array<i64: 1, 1, 96>}, {transform_indices = @transform_6, window_bounds = array<i64: 1, 32, 32>}, {transform_indices = @transform_7, window_bounds = array<i64: 1, 1, 32>}, {transform_indices = @transform_8, window_bounds = array<i64: 1, 1, 32>}, {transform_indices = @transform_9, window_bounds = array<i64: 1, 1, 32>}, {transform_indices = @transform_10, window_bounds = array<i64: 1, 32, 64>}, {transform_indices = @transform_11, window_bounds = array<i64: 1, 1, 64>}, {transform_indices = @transform_12, window_bounds = array<i64: 1, 64, 32>}, {transform_indices = @transform_13, window_bounds = array<i64: 1, 1, 32>}, {transform_indices = @transform_14, window_bounds = array<i64: 1, 1, 32>}, {transform_indices = @transform_15, window_bounds = array<i64: 1, 1, 32>}, {pipeline_mode = #tpu.pipeline_mode<synchronous>, transform_indices = @transform_16, window_bounds = array<i64: 16, 32>}]} {
    %c0_i32 = arith.constant 0 : i32
    %0 = arith.cmpi eq, %arg0, %c0_i32 : i32
    %1 = arith.extui %0 : i1 to i32
    %c0_i32_0 = arith.constant 0 : i32
    %2 = arith.cmpi ne, %1, %c0_i32_0 : i32
    scf.if %2 {
      %c0_88 = arith.constant 0 : index
      %c0_89 = arith.constant 0 : index
      %223 = vector.load %arg2[%c0_88, %c0_89] : memref<16x32xf32, #tpu.memory_space<vmem>>, vector<16x32xf32>
      %c0_90 = arith.constant 0 : index
      %c0_91 = arith.constant 0 : index
      %224 = vector.load %arg3[%c0_90, %c0_91] : memref<1x32xf32, #tpu.memory_space<vmem>>, vector<1x32xf32>
      %c0_92 = arith.constant 0 : index
      %c0_93 = arith.constant 0 : index
      %225 = vector.load %arg4[%c0_92, %c0_93] : memref<1x32xf32, #tpu.memory_space<vmem>>, vector<1x32xf32>
      %cst_94 = arith.constant dense<0.000000e+00> : vector<16xf32>
      %226 = vector.multi_reduction <add>, %223, %cst_94 [1] : vector<16x32xf32> to vector<16xf32>
      %227 = vector.shape_cast %226 : vector<16xf32> to vector<16x1xf32>
      %cst_95 = arith.constant 3.200000e+01 : f32
      %228 = vector.broadcast %cst_95 : f32 to vector<16x1xf32>
      %229 = arith.divf %227, %228 : vector<16x1xf32>
      %230 = vector.broadcast %229 : vector<16x1xf32> to vector<16x32xf32>
      %231 = arith.subf %223, %230 : vector<16x32xf32>
      %232 = arith.mulf %231, %231 : vector<16x32xf32>
      %cst_96 = arith.constant dense<0.000000e+00> : vector<16xf32>
      %233 = vector.multi_reduction <add>, %232, %cst_96 [1] : vector<16x32xf32> to vector<16xf32>
      %234 = vector.shape_cast %233 : vector<16xf32> to vector<16x1xf32>
      %cst_97 = arith.constant 3.200000e+01 : f32
      %235 = vector.broadcast %cst_97 : f32 to vector<16x1xf32>
      %236 = arith.divf %234, %235 : vector<16x1xf32>
      %237 = vector.broadcast %229 : vector<16x1xf32> to vector<16x32xf32>
      %238 = arith.subf %223, %237 : vector<16x32xf32>
      %cst_98 = arith.constant 9.99999996E-13 : f32
      %239 = vector.broadcast %cst_98 : f32 to vector<16x1xf32>
      %240 = arith.addf %236, %239 : vector<16x1xf32>
      %241 = math.rsqrt %240 : vector<16x1xf32>
      %242 = vector.broadcast %241 : vector<16x1xf32> to vector<16x32xf32>
      %243 = arith.mulf %238, %242 : vector<16x32xf32>
      %244 = vector.broadcast %224 : vector<1x32xf32> to vector<16x32xf32>
      %245 = arith.mulf %243, %244 : vector<16x32xf32>
      %246 = vector.broadcast %225 : vector<1x32xf32> to vector<16x32xf32>
      %247 = arith.addf %245, %246 : vector<16x32xf32>
      %c0_99 = arith.constant 0 : index
      %c0_100 = arith.constant 0 : index
      %248 = vector.load %arg17[%c0_99, %c0_100] : memref<16x32xf32, #tpu.memory_space<vmem>>, vector<16x32xf32>
      tpu.vector_store %arg17[%c0_99, %c0_100], %247 {strides = array<i32>} : memref<16x32xf32, #tpu.memory_space<vmem>>, vector<16x32xf32>,
    } else {
    }
    %c0 = arith.constant 0 : index
    %c0_1 = arith.constant 0 : index
    %3 = vector.load %arg17[%c0, %c0_1] : memref<16x32xf32, #tpu.memory_space<vmem>>, vector<16x32xf32>
    %4 = arith.truncf %3 : vector<16x32xf32> to vector<16x32xbf16>
    %c0_2 = arith.constant 0 : index
    %c0_3 = arith.constant 0 : index
    %c0_4 = arith.constant 0 : index
    %5 = vector.load %arg5[%c0_2, %c0_3, %c0_4] : memref<1x32x96xbf16, #tpu.memory_space<vmem>>, vector<1x32x96xbf16>
    %6 = vector.shape_cast %5 : vector<1x32x96xbf16> to vector<32x96xbf16>
    %cst = arith.constant dense<0.000000e+00> : vector<16x96xf32>
    %7 = tpu.matmul %4, %6, %cst {dimension_numbers = #tpu.dot_dimension_numbers<[1], [0], [0], [1], [0, 0, 1, 1], [], []>} : vector<16x32xbf16>, vector<32x96xbf16>, vector<16x96xf32> -> vector<16x96xf32>
    %c0_5 = arith.constant 0 : index
    %c0_6 = arith.constant 0 : index
    %c0_7 = arith.constant 0 : index
    %8 = vector.load %arg6[%c0_5, %c0_6, %c0_7] : memref<1x1x96xf32, #tpu.memory_space<vmem>>, vector<1x1x96xf32>
    %9 = vector.shape_cast %8 : vector<1x1x96xf32> to vector<1x96xf32>
    %10 = vector.broadcast %9 : vector<1x96xf32> to vector<16x96xf32>
    %11 = arith.addf %7, %10 : vector<16x96xf32>
    %c0_8 = arith.constant 0 : index
    %c0_9 = arith.constant 0 : index
    %12 = vector.load %arg1[%c0_8, %c0_9] : memref<2x8xf32, #tpu.memory_space<vmem>>, vector<2x8xf32>
    %cst_10 = arith.constant 1.000000e+00 : f32
    %13 = vector.broadcast %cst_10 : f32 to vector<2x8xf32>
    %14 = arith.subf %13, %12 : vector<2x8xf32>
    %cst_11 = arith.constant -1.000000e+04 : f32
    %15 = vector.broadcast %cst_11 : f32 to vector<2x8xf32>
    %16 = arith.mulf %14, %15 : vector<2x8xf32>
    %17 = vector.shape_cast %16 : vector<2x8xf32> to vector<2x1x8xf32>
    %18 = vector.extract_strided_slice %11 {offsets = [0, 0], sizes = [16, 8], strides = [1, 1]} : vector<16x96xf32> to vector<16x8xf32>
    %19 = vector.shape_cast %18 : vector<16x8xf32> to vector<2x8x8xf32>
    %20 = arith.truncf %19 : vector<2x8x8xf32> to vector<2x8x8xbf16>
    %21 = vector.extract_strided_slice %11 {offsets = [0, 32], sizes = [16, 8], strides = [1, 1]} : vector<16x96xf32> to vector<16x8xf32>
    %22 = vector.shape_cast %21 : vector<16x8xf32> to vector<2x8x8xf32>
    %23 = arith.truncf %22 : vector<2x8x8xf32> to vector<2x8x8xbf16>
    %24 = vector.extract_strided_slice %11 {offsets = [0, 64], sizes = [16, 8], strides = [1, 1]} : vector<16x96xf32> to vector<16x8xf32>
    %25 = vector.shape_cast %24 : vector<16x8xf32> to vector<2x8x8xf32>
    %26 = arith.truncf %25 : vector<2x8x8xf32> to vector<2x8x8xbf16>
    "tpu.trace_start"() <{level = 10 : i32, message = "bqd,bkd->bqk"}> : () -> ()
    %cst_12 = arith.constant dense<0.000000e+00> : vector<2x8x8xf32>
    %27 = tpu.matmul %20, %23, %cst_12 {dimension_numbers = #tpu.dot_dimension_numbers<[2], [2], [1], [1], [0, 0, 0, 1, 1, 1], [0], [0]>} : vector<2x8x8xbf16>, vector<2x8x8xbf16>, vector<2x8x8xf32> -> vector<2x8x8xf32>
    "tpu.trace_stop"() : () -> ()
    %cst_13 = arith.constant 0.353553385 : f32
    %28 = vector.broadcast %cst_13 : f32 to vector<2x8x8xf32>
    %29 = arith.mulf %27, %28 : vector<2x8x8xf32>
    %30 = vector.broadcast %17 : vector<2x1x8xf32> to vector<2x8x8xf32>
    %31 = arith.addf %29, %30 : vector<2x8x8xf32>
    %cst_14 = arith.constant dense<0xFF800000> : vector<2x8xf32>
    %32 = vector.multi_reduction <maximumf>, %31, %cst_14 [2] : vector<2x8x8xf32> to vector<2x8xf32>
    %33 = vector.shape_cast %32 : vector<2x8xf32> to vector<2x8x1xf32>
    %34 = vector.broadcast %33 : vector<2x8x1xf32> to vector<2x8x8xf32>
    %35 = arith.subf %31, %34 : vector<2x8x8xf32>
    %36 = math.exp %35 : vector<2x8x8xf32>
    %cst_15 = arith.constant dense<0.000000e+00> : vector<2x8xf32>
    %37 = vector.multi_reduction <add>, %36, %cst_15 [2] : vector<2x8x8xf32> to vector<2x8xf32>
    %38 = vector.shape_cast %37 : vector<2x8xf32> to vector<2x8x1xf32>
    %39 = tpu.reciprocal %38 {approx = true} : vector<2x8x1xf32> -> vector<2x8x1xf32>
    %40 = vector.broadcast %39 : vector<2x8x1xf32> to vector<2x8x8xf32>
    %41 = arith.mulf %36, %40 : vector<2x8x8xf32>
    %42 = arith.truncf %41 : vector<2x8x8xf32> to vector<2x8x8xbf16>
    "tpu.trace_start"() <{level = 10 : i32, message = "bqk,bkd->bqd"}> : () -> ()
    %cst_16 = arith.constant dense<0.000000e+00> : vector<2x8x8xf32>
    %43 = tpu.matmul %42, %26, %cst_16 {dimension_numbers = #tpu.dot_dimension_numbers<[2], [1], [1], [2], [0, 0, 0, 1, 1, 2], [0], [0]>} : vector<2x8x8xbf16>, vector<2x8x8xbf16>, vector<2x8x8xf32> -> vector<2x8x8xf32>
    "tpu.trace_stop"() : () -> ()
    %44 = vector.shape_cast %43 : vector<2x8x8xf32> to vector<16x8xf32>
    %c0_17 = arith.constant 0 : index
    %c0_18 = arith.constant 0 : index
    %45 = vector.load %arg18[%c0_17, %c0_18] : memref<16x32xf32, #tpu.memory_space<vmem>>, vector<16x8xf32>
    tpu.vector_store %arg18[%c0_17, %c0_18], %44 {strides = array<i32>} : memref<16x32xf32, #tpu.memory_space<vmem>>, vector<16x8xf32>,
    %46 = vector.extract_strided_slice %11 {offsets = [0, 8], sizes = [16, 8], strides = [1, 1]} : vector<16x96xf32> to vector<16x8xf32>
    %47 = vector.shape_cast %46 : vector<16x8xf32> to vector<2x8x8xf32>
    %48 = arith.truncf %47 : vector<2x8x8xf32> to vector<2x8x8xbf16>
    %49 = vector.extract_strided_slice %11 {offsets = [0, 40], sizes = [16, 8], strides = [1, 1]} : vector<16x96xf32> to vector<16x8xf32>
    %50 = vector.shape_cast %49 : vector<16x8xf32> to vector<2x8x8xf32>
    %51 = arith.truncf %50 : vector<2x8x8xf32> to vector<2x8x8xbf16>
    %52 = vector.extract_strided_slice %11 {offsets = [0, 72], sizes = [16, 8], strides = [1, 1]} : vector<16x96xf32> to vector<16x8xf32>
    %53 = vector.shape_cast %52 : vector<16x8xf32> to vector<2x8x8xf32>
    %54 = arith.truncf %53 : vector<2x8x8xf32> to vector<2x8x8xbf16>
    "tpu.trace_start"() <{level = 10 : i32, message = "bqd,bkd->bqk"}> : () -> ()
    %cst_19 = arith.constant dense<0.000000e+00> : vector<2x8x8xf32>
    %55 = tpu.matmul %48, %51, %cst_19 {dimension_numbers = #tpu.dot_dimension_numbers<[2], [2], [1], [1], [0, 0, 0, 1, 1, 1], [0], [0]>} : vector<2x8x8xbf16>, vector<2x8x8xbf16>, vector<2x8x8xf32> -> vector<2x8x8xf32>
    "tpu.trace_stop"() : () -> ()
    %cst_20 = arith.constant 0.353553385 : f32
    %56 = vector.broadcast %cst_20 : f32 to vector<2x8x8xf32>
    %57 = arith.mulf %55, %56 : vector<2x8x8xf32>
    %58 = vector.broadcast %17 : vector<2x1x8xf32> to vector<2x8x8xf32>
    %59 = arith.addf %57, %58 : vector<2x8x8xf32>
    %cst_21 = arith.constant dense<0xFF800000> : vector<2x8xf32>
    %60 = vector.multi_reduction <maximumf>, %59, %cst_21 [2] : vector<2x8x8xf32> to vector<2x8xf32>
    %61 = vector.shape_cast %60 : vector<2x8xf32> to vector<2x8x1xf32>
    %62 = vector.broadcast %61 : vector<2x8x1xf32> to vector<2x8x8xf32>
    %63 = arith.subf %59, %62 : vector<2x8x8xf32>
    %64 = math.exp %63 : vector<2x8x8xf32>
    %cst_22 = arith.constant dense<0.000000e+00> : vector<2x8xf32>
    %65 = vector.multi_reduction <add>, %64, %cst_22 [2] : vector<2x8x8xf32> to vector<2x8xf32>
    %66 = vector.shape_cast %65 : vector<2x8xf32> to vector<2x8x1xf32>
    %67 = tpu.reciprocal %66 {approx = true} : vector<2x8x1xf32> -> vector<2x8x1xf32>
    %68 = vector.broadcast %67 : vector<2x8x1xf32> to vector<2x8x8xf32>
    %69 = arith.mulf %64, %68 : vector<2x8x8xf32>
    %70 = arith.truncf %69 : vector<2x8x8xf32> to vector<2x8x8xbf16>
    "tpu.trace_start"() <{level = 10 : i32, message = "bqk,bkd->bqd"}> : () -> ()
    %cst_23 = arith.constant dense<0.000000e+00> : vector<2x8x8xf32>
    %71 = tpu.matmul %70, %54, %cst_23 {dimension_numbers = #tpu.dot_dimension_numbers<[2], [1], [1], [2], [0, 0, 0, 1, 1, 2], [0], [0]>} : vector<2x8x8xbf16>, vector<2x8x8xbf16>, vector<2x8x8xf32> -> vector<2x8x8xf32>
    "tpu.trace_stop"() : () -> ()
    %72 = vector.shape_cast %71 : vector<2x8x8xf32> to vector<16x8xf32>
    %c0_24 = arith.constant 0 : index
    %c8 = arith.constant 8 : index
    %73 = vector.load %arg18[%c0_24, %c8] : memref<16x32xf32, #tpu.memory_space<vmem>>, vector<16x8xf32>
    tpu.vector_store %arg18[%c0_24, %c8], %72 {strides = array<i32>} : memref<16x32xf32, #tpu.memory_space<vmem>>, vector<16x8xf32>,
    %74 = vector.extract_strided_slice %11 {offsets = [0, 16], sizes = [16, 8], strides = [1, 1]} : vector<16x96xf32> to vector<16x8xf32>
    %75 = vector.shape_cast %74 : vector<16x8xf32> to vector<2x8x8xf32>
    %76 = arith.truncf %75 : vector<2x8x8xf32> to vector<2x8x8xbf16>
    %77 = vector.extract_strided_slice %11 {offsets = [0, 48], sizes = [16, 8], strides = [1, 1]} : vector<16x96xf32> to vector<16x8xf32>
    %78 = vector.shape_cast %77 : vector<16x8xf32> to vector<2x8x8xf32>
    %79 = arith.truncf %78 : vector<2x8x8xf32> to vector<2x8x8xbf16>
    %80 = vector.extract_strided_slice %11 {offsets = [0, 80], sizes = [16, 8], strides = [1, 1]} : vector<16x96xf32> to vector<16x8xf32>
    %81 = vector.shape_cast %80 : vector<16x8xf32> to vector<2x8x8xf32>
    %82 = arith.truncf %81 : vector<2x8x8xf32> to vector<2x8x8xbf16>
    "tpu.trace_start"() <{level = 10 : i32, message = "bqd,bkd->bqk"}> : () -> ()
    %cst_25 = arith.constant dense<0.000000e+00> : vector<2x8x8xf32>
    %83 = tpu.matmul %76, %79, %cst_25 {dimension_numbers = #tpu.dot_dimension_numbers<[2], [2], [1], [1], [0, 0, 0, 1, 1, 1], [0], [0]>} : vector<2x8x8xbf16>, vector<2x8x8xbf16>, vector<2x8x8xf32> -> vector<2x8x8xf32>
    "tpu.trace_stop"() : () -> ()
    %cst_26 = arith.constant 0.353553385 : f32
    %84 = vector.broadcast %cst_26 : f32 to vector<2x8x8xf32>
    %85 = arith.mulf %83, %84 : vector<2x8x8xf32>
    %86 = vector.broadcast %17 : vector<2x1x8xf32> to vector<2x8x8xf32>
    %87 = arith.addf %85, %86 : vector<2x8x8xf32>
    %cst_27 = arith.constant dense<0xFF800000> : vector<2x8xf32>
    %88 = vector.multi_reduction <maximumf>, %87, %cst_27 [2] : vector<2x8x8xf32> to vector<2x8xf32>
    %89 = vector.shape_cast %88 : vector<2x8xf32> to vector<2x8x1xf32>
    %90 = vector.broadcast %89 : vector<2x8x1xf32> to vector<2x8x8xf32>
    %91 = arith.subf %87, %90 : vector<2x8x8xf32>
    %92 = math.exp %91 : vector<2x8x8xf32>
    %cst_28 = arith.constant dense<0.000000e+00> : vector<2x8xf32>
    %93 = vector.multi_reduction <add>, %92, %cst_28 [2] : vector<2x8x8xf32> to vector<2x8xf32>
    %94 = vector.shape_cast %93 : vector<2x8xf32> to vector<2x8x1xf32>
    %95 = tpu.reciprocal %94 {approx = true} : vector<2x8x1xf32> -> vector<2x8x1xf32>
    %96 = vector.broadcast %95 : vector<2x8x1xf32> to vector<2x8x8xf32>
    %97 = arith.mulf %92, %96 : vector<2x8x8xf32>
    %98 = arith.truncf %97 : vector<2x8x8xf32> to vector<2x8x8xbf16>
    "tpu.trace_start"() <{level = 10 : i32, message = "bqk,bkd->bqd"}> : () -> ()
    %cst_29 = arith.constant dense<0.000000e+00> : vector<2x8x8xf32>
    %99 = tpu.matmul %98, %82, %cst_29 {dimension_numbers = #tpu.dot_dimension_numbers<[2], [1], [1], [2], [0, 0, 0, 1, 1, 2], [0], [0]>} : vector<2x8x8xbf16>, vector<2x8x8xbf16>, vector<2x8x8xf32> -> vector<2x8x8xf32>
    "tpu.trace_stop"() : () -> ()
    %100 = vector.shape_cast %99 : vector<2x8x8xf32> to vector<16x8xf32>
    %c0_30 = arith.constant 0 : index
    %c16 = arith.constant 16 : index
    %101 = vector.load %arg18[%c0_30, %c16] : memref<16x32xf32, #tpu.memory_space<vmem>>, vector<16x8xf32>
    tpu.vector_store %arg18[%c0_30, %c16], %100 {strides = array<i32>} : memref<16x32xf32, #tpu.memory_space<vmem>>, vector<16x8xf32>,
    %102 = vector.extract_strided_slice %11 {offsets = [0, 24], sizes = [16, 8], strides = [1, 1]} : vector<16x96xf32> to vector<16x8xf32>
    %103 = vector.shape_cast %102 : vector<16x8xf32> to vector<2x8x8xf32>
    %104 = arith.truncf %103 : vector<2x8x8xf32> to vector<2x8x8xbf16>
    %105 = vector.extract_strided_slice %11 {offsets = [0, 56], sizes = [16, 8], strides = [1, 1]} : vector<16x96xf32> to vector<16x8xf32>
    %106 = vector.shape_cast %105 : vector<16x8xf32> to vector<2x8x8xf32>
    %107 = arith.truncf %106 : vector<2x8x8xf32> to vector<2x8x8xbf16>
    %108 = vector.extract_strided_slice %11 {offsets = [0, 88], sizes = [16, 8], strides = [1, 1]} : vector<16x96xf32> to vector<16x8xf32>
    %109 = vector.shape_cast %108 : vector<16x8xf32> to vector<2x8x8xf32>
    %110 = arith.truncf %109 : vector<2x8x8xf32> to vector<2x8x8xbf16>
    "tpu.trace_start"() <{level = 10 : i32, message = "bqd,bkd->bqk"}> : () -> ()
    %cst_31 = arith.constant dense<0.000000e+00> : vector<2x8x8xf32>
    %111 = tpu.matmul %104, %107, %cst_31 {dimension_numbers = #tpu.dot_dimension_numbers<[2], [2], [1], [1], [0, 0, 0, 1, 1, 1], [0], [0]>} : vector<2x8x8xbf16>, vector<2x8x8xbf16>, vector<2x8x8xf32> -> vector<2x8x8xf32>
    "tpu.trace_stop"() : () -> ()
    %cst_32 = arith.constant 0.353553385 : f32
    %112 = vector.broadcast %cst_32 : f32 to vector<2x8x8xf32>
    %113 = arith.mulf %111, %112 : vector<2x8x8xf32>
    %114 = vector.broadcast %17 : vector<2x1x8xf32> to vector<2x8x8xf32>
    %115 = arith.addf %113, %114 : vector<2x8x8xf32>
    %cst_33 = arith.constant dense<0xFF800000> : vector<2x8xf32>
    %116 = vector.multi_reduction <maximumf>, %115, %cst_33 [2] : vector<2x8x8xf32> to vector<2x8xf32>
    %117 = vector.shape_cast %116 : vector<2x8xf32> to vector<2x8x1xf32>
    %118 = vector.broadcast %117 : vector<2x8x1xf32> to vector<2x8x8xf32>
    %119 = arith.subf %115, %118 : vector<2x8x8xf32>
    %120 = math.exp %119 : vector<2x8x8xf32>
    %cst_34 = arith.constant dense<0.000000e+00> : vector<2x8xf32>
    %121 = vector.multi_reduction <add>, %120, %cst_34 [2] : vector<2x8x8xf32> to vector<2x8xf32>
    %122 = vector.shape_cast %121 : vector<2x8xf32> to vector<2x8x1xf32>
    %123 = tpu.reciprocal %122 {approx = true} : vector<2x8x1xf32> -> vector<2x8x1xf32>
    %124 = vector.broadcast %123 : vector<2x8x1xf32> to vector<2x8x8xf32>
    %125 = arith.mulf %120, %124 : vector<2x8x8xf32>
    %126 = arith.truncf %125 : vector<2x8x8xf32> to vector<2x8x8xbf16>
    "tpu.trace_start"() <{level = 10 : i32, message = "bqk,bkd->bqd"}> : () -> ()
    %cst_35 = arith.constant dense<0.000000e+00> : vector<2x8x8xf32>
    %127 = tpu.matmul %126, %110, %cst_35 {dimension_numbers = #tpu.dot_dimension_numbers<[2], [1], [1], [2], [0, 0, 0, 1, 1, 2], [0], [0]>} : vector<2x8x8xbf16>, vector<2x8x8xbf16>, vector<2x8x8xf32> -> vector<2x8x8xf32>
    "tpu.trace_stop"() : () -> ()
    %128 = vector.shape_cast %127 : vector<2x8x8xf32> to vector<16x8xf32>
    %c0_36 = arith.constant 0 : index
    %c24 = arith.constant 24 : index
    %129 = vector.load %arg18[%c0_36, %c24] : memref<16x32xf32, #tpu.memory_space<vmem>>, vector<16x8xf32>
    tpu.vector_store %arg18[%c0_36, %c24], %128 {strides = array<i32>} : memref<16x32xf32, #tpu.memory_space<vmem>>, vector<16x8xf32>,
    %c0_37 = arith.constant 0 : index
    %c0_38 = arith.constant 0 : index
    %130 = vector.load %arg18[%c0_37, %c0_38] : memref<16x32xf32, #tpu.memory_space<vmem>>, vector<16x32xf32>
    %131 = arith.truncf %130 : vector<16x32xf32> to vector<16x32xbf16>
    %c0_39 = arith.constant 0 : index
    %c0_40 = arith.constant 0 : index
    %c0_41 = arith.constant 0 : index
    %132 = vector.load %arg7[%c0_39, %c0_40, %c0_41] : memref<1x32x32xbf16, #tpu.memory_space<vmem>>, vector<1x32x32xbf16>
    %133 = vector.shape_cast %132 : vector<1x32x32xbf16> to vector<32x32xbf16>
    %cst_42 = arith.constant dense<0.000000e+00> : vector<16x32xf32>
    %134 = tpu.matmul %131, %133, %cst_42 {dimension_numbers = #tpu.dot_dimension_numbers<[1], [0], [0], [1], [0, 0, 1, 1], [], []>} : vector<16x32xbf16>, vector<32x32xbf16>, vector<16x32xf32> -> vector<16x32xf32>
    %c0_43 = arith.constant 0 : index
    %c0_44 = arith.constant 0 : index
    %c0_45 = arith.constant 0 : index
    %135 = vector.load %arg8[%c0_43, %c0_44, %c0_45] : memref<1x1x32xf32, #tpu.memory_space<vmem>>, vector<1x1x32xf32>
    %136 = vector.shape_cast %135 : vector<1x1x32xf32> to vector<1x32xf32>
    %137 = vector.broadcast %136 : vector<1x32xf32> to vector<16x32xf32>
    %138 = arith.addf %134, %137 : vector<16x32xf32>
    %139 = arith.addf %138, %3 : vector<16x32xf32>
    %c0_46 = arith.constant 0 : index
    %c0_47 = arith.constant 0 : index
    %c0_48 = arith.constant 0 : index
    %140 = vector.load %arg9[%c0_46, %c0_47, %c0_48] : memref<1x1x32xf32, #tpu.memory_space<vmem>>, vector<1x1x32xf32>
    %141 = vector.shape_cast %140 : vector<1x1x32xf32> to vector<1x32xf32>
    %c0_49 = arith.constant 0 : index
    %c0_50 = arith.constant 0 : index
    %c0_51 = arith.constant 0 : index
    %142 = vector.load %arg10[%c0_49, %c0_50, %c0_51] : memref<1x1x32xf32, #tpu.memory_space<vmem>>, vector<1x1x32xf32>
    %143 = vector.shape_cast %142 : vector<1x1x32xf32> to vector<1x32xf32>
    %cst_52 = arith.constant dense<0.000000e+00> : vector<16xf32>
    %144 = vector.multi_reduction <add>, %139, %cst_52 [1] : vector<16x32xf32> to vector<16xf32>
    %145 = vector.shape_cast %144 : vector<16xf32> to vector<16x1xf32>
    %cst_53 = arith.constant 3.200000e+01 : f32
    %146 = vector.broadcast %cst_53 : f32 to vector<16x1xf32>
    %147 = arith.divf %145, %146 : vector<16x1xf32>
    %148 = vector.broadcast %147 : vector<16x1xf32> to vector<16x32xf32>
    %149 = arith.subf %139, %148 : vector<16x32xf32>
    %150 = arith.mulf %149, %149 : vector<16x32xf32>
    %cst_54 = arith.constant dense<0.000000e+00> : vector<16xf32>
    %151 = vector.multi_reduction <add>, %150, %cst_54 [1] : vector<16x32xf32> to vector<16xf32>
    %152 = vector.shape_cast %151 : vector<16xf32> to vector<16x1xf32>
    %cst_55 = arith.constant 3.200000e+01 : f32
    %153 = vector.broadcast %cst_55 : f32 to vector<16x1xf32>
    %154 = arith.divf %152, %153 : vector<16x1xf32>
    %155 = vector.broadcast %147 : vector<16x1xf32> to vector<16x32xf32>
    %156 = arith.subf %139, %155 : vector<16x32xf32>
    %cst_56 = arith.constant 9.99999996E-13 : f32
    %157 = vector.broadcast %cst_56 : f32 to vector<16x1xf32>
    %158 = arith.addf %154, %157 : vector<16x1xf32>
    %159 = math.rsqrt %158 : vector<16x1xf32>
    %160 = vector.broadcast %159 : vector<16x1xf32> to vector<16x32xf32>
    %161 = arith.mulf %156, %160 : vector<16x32xf32>
    %162 = vector.broadcast %141 : vector<1x32xf32> to vector<16x32xf32>
    %163 = arith.mulf %161, %162 : vector<16x32xf32>
    %164 = vector.broadcast %143 : vector<1x32xf32> to vector<16x32xf32>
    %165 = arith.addf %163, %164 : vector<16x32xf32>
    %166 = arith.truncf %165 : vector<16x32xf32> to vector<16x32xbf16>
    %c0_57 = arith.constant 0 : index
    %c0_58 = arith.constant 0 : index
    %c0_59 = arith.constant 0 : index
    %167 = vector.load %arg11[%c0_57, %c0_58, %c0_59] : memref<1x32x64xbf16, #tpu.memory_space<vmem>>, vector<1x32x64xbf16>
    %168 = vector.shape_cast %167 : vector<1x32x64xbf16> to vector<32x64xbf16>
    %cst_60 = arith.constant dense<0.000000e+00> : vector<16x64xf32>
    %169 = tpu.matmul %166, %168, %cst_60 {dimension_numbers = #tpu.dot_dimension_numbers<[1], [0], [0], [1], [0, 0, 1, 1], [], []>} : vector<16x32xbf16>, vector<32x64xbf16>, vector<16x64xf32> -> vector<16x64xf32>
    %c0_61 = arith.constant 0 : index
    %c0_62 = arith.constant 0 : index
    %c0_63 = arith.constant 0 : index
    %170 = vector.load %arg12[%c0_61, %c0_62, %c0_63] : memref<1x1x64xf32, #tpu.memory_space<vmem>>, vector<1x1x64xf32>
    %171 = vector.shape_cast %170 : vector<1x1x64xf32> to vector<1x64xf32>
    %172 = vector.broadcast %171 : vector<1x64xf32> to vector<16x64xf32>
    %173 = arith.addf %169, %172 : vector<16x64xf32>
    %cst_64 = arith.constant 5.000000e-01 : f32
    %174 = vector.broadcast %cst_64 : f32 to vector<16x64xf32>
    %175 = arith.mulf %174, %173 : vector<16x64xf32>
    %cst_65 = arith.constant 4.471500e-02 : f32
    %176 = vector.broadcast %cst_65 : f32 to vector<16x64xf32>
    %177 = arith.mulf %176, %173 : vector<16x64xf32>
    %178 = arith.mulf %177, %173 : vector<16x64xf32>
    %179 = arith.mulf %178, %173 : vector<16x64xf32>
    %180 = arith.addf %173, %179 : vector<16x64xf32>
    %cst_66 = arith.constant 0.797884583 : f32
    %181 = vector.broadcast %cst_66 : f32 to vector<16x64xf32>
    %182 = arith.mulf %181, %180 : vector<16x64xf32>
    %183 = math.tanh %182 : vector<16x64xf32>
    %cst_67 = arith.constant 1.000000e+00 : f32
    %184 = vector.broadcast %cst_67 : f32 to vector<16x64xf32>
    %185 = arith.addf %184, %183 : vector<16x64xf32>
    %186 = arith.mulf %175, %185 : vector<16x64xf32>
    %187 = arith.truncf %186 : vector<16x64xf32> to vector<16x64xbf16>
    %c0_68 = arith.constant 0 : index
    %c0_69 = arith.constant 0 : index
    %c0_70 = arith.constant 0 : index
    %188 = vector.load %arg13[%c0_68, %c0_69, %c0_70] : memref<1x64x32xbf16, #tpu.memory_space<vmem>>, vector<1x64x32xbf16>
    %189 = vector.shape_cast %188 : vector<1x64x32xbf16> to vector<64x32xbf16>
    %cst_71 = arith.constant dense<0.000000e+00> : vector<16x32xf32>
    %190 = tpu.matmul %187, %189, %cst_71 {dimension_numbers = #tpu.dot_dimension_numbers<[1], [0], [0], [1], [0, 0, 1, 1], [], []>} : vector<16x64xbf16>, vector<64x32xbf16>, vector<16x32xf32> -> vector<16x32xf32>
    %c0_72 = arith.constant 0 : index
    %c0_73 = arith.constant 0 : index
    %c0_74 = arith.constant 0 : index
    %191 = vector.load %arg14[%c0_72, %c0_73, %c0_74] : memref<1x1x32xf32, #tpu.memory_space<vmem>>, vector<1x1x32xf32>
    %192 = vector.shape_cast %191 : vector<1x1x32xf32> to vector<1x32xf32>
    %193 = vector.broadcast %192 : vector<1x32xf32> to vector<16x32xf32>
    %194 = arith.addf %190, %193 : vector<16x32xf32>
    %195 = arith.addf %194, %165 : vector<16x32xf32>
    %c0_75 = arith.constant 0 : index
    %c0_76 = arith.constant 0 : index
    %c0_77 = arith.constant 0 : index
    %196 = vector.load %arg15[%c0_75, %c0_76, %c0_77] : memref<1x1x32xf32, #tpu.memory_space<vmem>>, vector<1x1x32xf32>
    %197 = vector.shape_cast %196 : vector<1x1x32xf32> to vector<1x32xf32>
    %c0_78 = arith.constant 0 : index
    %c0_79 = arith.constant 0 : index
    %c0_80 = arith.constant 0 : index
    %198 = vector.load %arg16[%c0_78, %c0_79, %c0_80] : memref<1x1x32xf32, #tpu.memory_space<vmem>>, vector<1x1x32xf32>
    %199 = vector.shape_cast %198 : vector<1x1x32xf32> to vector<1x32xf32>
    %cst_81 = arith.constant dense<0.000000e+00> : vector<16xf32>
    %200 = vector.multi_reduction <add>, %195, %cst_81 [1] : vector<16x32xf32> to vector<16xf32>
    %201 = vector.shape_cast %200 : vector<16xf32> to vector<16x1xf32>
    %cst_82 = arith.constant 3.200000e+01 : f32
    %202 = vector.broadcast %cst_82 : f32 to vector<16x1xf32>
    %203 = arith.divf %201, %202 : vector<16x1xf32>
    %204 = vector.broadcast %203 : vector<16x1xf32> to vector<16x32xf32>
    %205 = arith.subf %195, %204 : vector<16x32xf32>
    %206 = arith.mulf %205, %205 : vector<16x32xf32>
    %cst_83 = arith.constant dense<0.000000e+00> : vector<16xf32>
    %207 = vector.multi_reduction <add>, %206, %cst_83 [1] : vector<16x32xf32> to vector<16xf32>
    %208 = vector.shape_cast %207 : vector<16xf32> to vector<16x1xf32>
    %cst_84 = arith.constant 3.200000e+01 : f32
    %209 = vector.broadcast %cst_84 : f32 to vector<16x1xf32>
    %210 = arith.divf %208, %209 : vector<16x1xf32>
    %211 = vector.broadcast %203 : vector<16x1xf32> to vector<16x32xf32>
    %212 = arith.subf %195, %211 : vector<16x32xf32>
    %cst_85 = arith.constant 9.99999996E-13 : f32
    %213 = vector.broadcast %cst_85 : f32 to vector<16x1xf32>
    %214 = arith.addf %210, %213 : vector<16x1xf32>
    %215 = math.rsqrt %214 : vector<16x1xf32>
    %216 = vector.broadcast %215 : vector<16x1xf32> to vector<16x32xf32>
    %217 = arith.mulf %212, %216 : vector<16x32xf32>
    %218 = vector.broadcast %197 : vector<1x32xf32> to vector<16x32xf32>
    %219 = arith.mulf %217, %218 : vector<16x32xf32>
    %220 = vector.broadcast %199 : vector<1x32xf32> to vector<16x32xf32>
    %221 = arith.addf %219, %220 : vector<16x32xf32>
    %c0_86 = arith.constant 0 : index
    %c0_87 = arith.constant 0 : index
    %222 = vector.load %arg17[%c0_86, %c0_87] : memref<16x32xf32, #tpu.memory_space<vmem>>, vector<16x32xf32>
    tpu.vector_store %arg17[%c0_86, %c0_87], %221 {strides = array<i32>} : memref<16x32xf32, #tpu.memory_space<vmem>>, vector<16x32xf32>,
    return
  }
  func.func @transform_0(%arg0: i32) -> (i32, i32) {
    %c0_i32 = arith.constant 0 : i32
    %c0_i32_0 = arith.constant 0 : i32
    %c0_i32_1 = arith.constant 0 : i32
    return %c0_i32, %c0_i32_0 : i32, i32
  }
  func.func @transform_1(%arg0: i32) -> (i32, i32) {
    %c0_i32 = arith.constant 0 : i32
    %c0_i32_0 = arith.constant 0 : i32
    %c0_i32_1 = arith.constant 0 : i32
    return %c0_i32, %c0_i32_0 : i32, i32
  }
  func.func @transform_2(%arg0: i32) -> (i32, i32) {
    %c0_i32 = arith.constant 0 : i32
    %c0_i32_0 = arith.constant 0 : i32
    %c0_i32_1 = arith.constant 0 : i32
    return %c0_i32, %c0_i32_0 : i32, i32
  }
  func.func @transform_3(%arg0: i32) -> (i32, i32) {
    %c0_i32 = arith.constant 0 : i32
    %c0_i32_0 = arith.constant 0 : i32
    %c0_i32_1 = arith.constant 0 : i32
    return %c0_i32, %c0_i32_0 : i32, i32
  }
  func.func @transform_4(%arg0: i32) -> (i32, i32, i32) {
    %c0_i32 = arith.constant 0 : i32
    %c0_i32_0 = arith.constant 0 : i32
    %c0_i32_1 = arith.constant 0 : i32
    return %arg0, %c0_i32, %c0_i32_0 : i32, i32, i32
  }
  func.func @transform_5(%arg0: i32) -> (i32, i32, i32) {
    %c0_i32 = arith.constant 0 : i32
    %c0_i32_0 = arith.constant 0 : i32
    %c0_i32_1 = arith.constant 0 : i32
    return %arg0, %c0_i32, %c0_i32_0 : i32, i32, i32
  }
  func.func @transform_6(%arg0: i32) -> (i32, i32, i32) {
    %c0_i32 = arith.constant 0 : i32
    %c0_i32_0 = arith.constant 0 : i32
    %c0_i32_1 = arith.constant 0 : i32
    return %arg0, %c0_i32, %c0_i32_0 : i32, i32, i32
  }
  func.func @transform_7(%arg0: i32) -> (i32, i32, i32) {
    %c0_i32 = arith.constant 0 : i32
    %c0_i32_0 = arith.constant 0 : i32
    %c0_i32_1 = arith.constant 0 : i32
    return %arg0, %c0_i32, %c0_i32_0 : i32, i32, i32
  }
  func.func @transform_8(%arg0: i32) -> (i32, i32, i32) {
    %c0_i32 = arith.constant 0 : i32
    %c0_i32_0 = arith.constant 0 : i32
    %c0_i32_1 = arith.constant 0 : i32
    return %arg0, %c0_i32, %c0_i32_0 : i32, i32, i32
  }
  func.func @transform_9(%arg0: i32) -> (i32, i32, i32) {
    %c0_i32 = arith.constant 0 : i32
    %c0_i32_0 = arith.constant 0 : i32
    %c0_i32_1 = arith.constant 0 : i32
    return %arg0, %c0_i32, %c0_i32_0 : i32, i32, i32
  }
  func.func @transform_10(%arg0: i32) -> (i32, i32, i32) {
    %c0_i32 = arith.constant 0 : i32
    %c0_i32_0 = arith.constant 0 : i32
    %c0_i32_1 = arith.constant 0 : i32
    return %arg0, %c0_i32, %c0_i32_0 : i32, i32, i32
  }
  func.func @transform_11(%arg0: i32) -> (i32, i32, i32) {
    %c0_i32 = arith.constant 0 : i32
    %c0_i32_0 = arith.constant 0 : i32
    %c0_i32_1 = arith.constant 0 : i32
    return %arg0, %c0_i32, %c0_i32_0 : i32, i32, i32
  }
  func.func @transform_12(%arg0: i32) -> (i32, i32, i32) {
    %c0_i32 = arith.constant 0 : i32
    %c0_i32_0 = arith.constant 0 : i32
    %c0_i32_1 = arith.constant 0 : i32
    return %arg0, %c0_i32, %c0_i32_0 : i32, i32, i32
  }
  func.func @transform_13(%arg0: i32) -> (i32, i32, i32) {
    %c0_i32 = arith.constant 0 : i32
    %c0_i32_0 = arith.constant 0 : i32
    %c0_i32_1 = arith.constant 0 : i32
    return %arg0, %c0_i32, %c0_i32_0 : i32, i32, i32
  }
  func.func @transform_14(%arg0: i32) -> (i32, i32, i32) {
    %c0_i32 = arith.constant 0 : i32
    %c0_i32_0 = arith.constant 0 : i32
    %c0_i32_1 = arith.constant 0 : i32
    return %arg0, %c0_i32, %c0_i32_0 : i32, i32, i32
  }
  func.func @transform_15(%arg0: i32) -> (i32, i32, i32) {
    %c0_i32 = arith.constant 0 : i32
    %c0_i32_0 = arith.constant 0 : i32
    %c0_i32_1 = arith.constant 0 : i32
    return %arg0, %c0_i32, %c0_i32_0 : i32, i32, i32
  }
  func.func @transform_16(%arg0: i32) -> (i32, i32) {
    %c0_i32 = arith.constant 0 : i32
    %c0_i32_0 = arith.constant 0 : i32
    %c0_i32_1 = arith.constant 0 : i32
    return %c0_i32, %c0_i32_0 : i32, i32
  }
}

</mosaic_0001>

<bundles_post_ra>
// kernel: bert_classifier_forward.3
= control target key start
LH: loop header
LB: loop body
LE: loop exit
PB: predicated region body
PF: predicated region fallthrough
CT: control target
= control target key end

     0   :  { %v204_v0 = vmov 0.0   ;;  %vm205_vm0 = vmmov 0   ;;  %vm48_vm1 = vcmask 261120   ;;  %vm160_vm2 = vcmask 1024   ;;  %s262_s1 = inlined_call_operand.vmem [shape: bf16[32,32], index: 1, kind: input, shape index: {}]   ;;  %s263_s0 = inlined_call_operand.vmem [shape: f32[2,32], index: 0, kind: input, shape index: {}]   ;;  %s264_s3 = inlined_call_operand.vmem [shape: bf16[32,1], index: 3, kind: input, shape index: {}]   ;;  %s265_s4 = inlined_call_operand.<no memory space> [shape: f32[1,1], index: 4, kind: input, shape index: {}]   ;;  %s266_s2 = inlined_call_operand.vmem [shape: f32[1,32], index: 2, kind: input, shape index: {}]   ;;  %s267_s5 = inlined_call_operand.vmem [shape: f32[2,1], index: 5, kind: output, shape index: {}]  }
   0x1   :  { %180 = vmatprep.subr.bf16.mxu0 %v204_v0  ;;  %v198_v1 = vld [vmem:[%s262_s1] sm:$0xff]   ;;  %184 = vmatprep.mubr.msk.bf16.mxu0 %vm205_vm0, %v204_v0  ;;  %v199_v2 = vld [vmem:[%s262_s1 + $0x8] sm:$0xff]   ;;  %v10_v7 = vstv %s265_s4 }
   0x2   :  { %188 = vmatprep.subr.bf16.mxu1 %v204_v0  ;;  %192 = vmatprep.mubr.msk.bf16.mxu1 %vm205_vm0, %v204_v0  ;;  %v23_v3 = vld [vmem:[%s263_s0] sm:$0x3]  ;;  %v201_v6 = vld [vmem:[%s264_s3 + $0x8] sm:$0xff]   ;;  %11 = vst [vmem:[#allocation2] sm:$0x1] %v10_v7 }
   0x3   :  { %181 = vmatpush3.bf16.msra.mxu0 %v198_v1  ;;  %v24_v4 = vpack.c.bf16 %v23_v3, %v23_v3  ;;  %v200_v5 = vld [vmem:[%s264_s3] sm:$0xff]  }
   0x4   :  { %182 = vmatprep.subr.bf16.mxu0 %v204_v0  ;;  %189 = vmatpush3.bf16.msra.mxu1 %v200_v5  ;;  %v166_v8 = vld [vmem:[%s266_s2] ss:$0 sm:$0xff] }
   0x5   :  { %190 = vmatprep.subr.bf16.mxu1 %v204_v0 }
   0x7   :  { %183 = vmatpush3.bf16.msra.mxu0 %v199_v2 }
   0x8   :  { %191 = vmatpush3.bf16.msra.mxu1 %v201_v6 }
   0x9   :  { %v170_v16 = vld [vmem:[#allocation2] ss:$0 sm:$0xff] }
   0xa   :  { %185 = vmatmul.mubr.msk.bf16.vlgmr.msra.gmra.mrb[0].mxu0 %vm48_vm1, %v24_v4 }
  0xdd   :  { %v86_v9 = vpop.f32.mrb[0].mxu0 }
  0xde   :  { %v87_v10 = vadd.f32 %v166_v8, %v86_v9  ;;  %v186_v11 = vpop.f32.mrb[1].mxu0 }
  0xdf   :  { %v89_v12 = vpop.f32.mrb[2].mxu0 }
  0xe0   :  { %202 = vtanh.f32 %v87_v10  ;;  %v187_v13 = vpop.f32.mrb[3].mxu0 }
  0xea   :  { %v203_v14 = vpop.eup %202 }
  0xeb   :  { %v93_v15 = vpack.c.bf16 %v203_v14, %v203_v14 }
  0xed   :  { %193 = vmatmul.mubr.msk.bf16.vlgmr.msra.gmra.mrb[0].mxu1 %vm48_vm1, %v93_v15 }
 0x1c0   :  { %v154_v17 = vpop.f32.mrb[0].mxu1 }
 0x1c1   :  { %v155_v18 = vadd.f32 %v170_v16, %v154_v17  ;;  %v194_v19 = vpop.f32.mrb[1].mxu1 }
 0x1c2   :  { %v157_v20 = vpop.f32.mrb[2].mxu1 }
 0x1c3   :  { %161 = vst.msk [vmem:[%s267_s5] sm:$0x3] %vm160_vm2, %v155_v18  ;;  %v195_v21 = vpop.f32.mrb[3].mxu1 }

// kernel: bert_classifier_forward.2
= control target key start
LH: loop header
LB: loop body
LE: loop exit
PB: predicated region body
PF: predicated region fallthrough
CT: control target
= control target key end

     0   :  { %s2676_s21 = smov 0   ;;  %s3019_s0 = inlined_call_operand.vmem [shape: f32[2,8], index: 0, kind: input, shape index: {}]   ;;  %s3020_s1 = inlined_call_operand.vmem [shape: f32[16,32], index: 1, kind: input, shape index: {}]   ;;  %s3021_s2 = inlined_call_operand.vmem [shape: f32[1,32], index: 2, kind: input, shape index: {}]   ;;  %s3022_s3 = inlined_call_operand.vmem [shape: f32[1,32], index: 3, kind: input, shape index: {}]   ;;  %s3023_s4 = inlined_call_operand.vmem [shape: bf16[2,32,96], index: 4, kind: input, shape index: {}]   ;;  %s3024_s5 = inlined_call_operand.vmem [shape: f32[2,1,96], index: 5, kind: input, shape index: {}]   ;;  %s3025_s6 = inlined_call_operand.vmem [shape: bf16[2,32,32], index: 6, kind: input, shape index: {}]   ;;  %s3026_s7 = inlined_call_operand.vmem [shape: f32[2,1,32], index: 7, kind: input, shape index: {}]   ;;  %s3027_s8 = inlined_call_operand.vmem [shape: f32[2,1,32], index: 8, kind: input, shape index: {}]   ;;  %s3028_s9 = inlined_call_operand.vmem [shape: f32[2,1,32], index: 9, kind: input, shape index: {}]   ;;  %s3029_s10 = inlined_call_operand.vmem [shape: bf16[2,32,64], index: 10, kind: input, shape index: {}]   ;;  %s3030_s11 = inlined_call_operand.vmem [shape: f32[2,1,64], index: 11, kind: input, shape index: {}]   ;;  %s3031_s12 = inlined_call_operand.vmem [shape: bf16[2,64,32], index: 12, kind: input, shape index: {}]   ;;  %s3032_s13 = inlined_call_operand.vmem [shape: f32[2,1,32], index: 13, kind: input, shape index: {}]   ;;  %s3033_s14 = inlined_call_operand.vmem [shape: f32[2,1,32], index: 14, kind: input, shape index: {}]   ;;  %s3034_s15 = inlined_call_operand.vmem [shape: f32[2,1,32], index: 15, kind: input, shape index: {}]   ;;  %s3035_s16 = inlined_call_operand.vmem [shape: f32[16,32], index: 16, kind: output, shape index: {}]  }
   0x1   :  { %3040 = sst [smem:[#allocation5_spill]] %s3019_s0 }
   0x2   :  { %3041 = sst [smem:[#allocation6_spill]] %s3021_s2 }
   0x3   :  { %3042 = sst [smem:[#allocation7_spill]] %s3022_s3 }
   0x4   :  { %3043 = sst [smem:[#allocation8_spill]] %s3023_s4 }
   0x5   :  { %3044 = sst [smem:[#allocation9_spill]] %s3025_s6 }
   0x6   :  { %3045 = sst [smem:[#allocation10_spill]] %s3035_s16 }
   0x7 LB: > { %3046 = sst [smem:[#allocation3_spill]] %s2572_s21  ;;  %s2246_s22 = sadd.s32 4294967295, %s2572_s21   ;;  %s2572_s21 = sphi %s2676_s21, %s26_s21  }
   0x8   : > { %p2249_p0 = scmp.ge.s32.totalorder %s2572_s21, 1  ;;  %p551_p1 = scmp.lt.s32.totalorder %s2572_s21, 3 }
   0xa   : > { %p552_p2 = pnand %p2249_p0, %p551_p1 }
   0xc   : > { %555 = sbr.rel (%p552_p2) target bundleno = 4492 (0x118c), region = 84 }
  0x13   : > { %p635_p3 = scmp.lt.s32.totalorder %s2246_s22, 1  ;;  %s3047_s4 = sld [smem:[#allocation8_spill]] }
  0x14   : > { %s3048_s6 = sld [smem:[#allocation9_spill]]  ;;  %p2258_p4 = scmp.ne.s32.totalorder %s2246_s22, 0 }
  0x15   : > { %s2684_s23 = scalar_select %p635_p3, %s2246_s22, 1 }
  0x16   : > { %683 = sbr.rel (%p2258_p4) target bundleno = 341 (0x155), region = 88  ;;  %v684_v0 = vld [vmem:[%s3020_s1] sm:$0xff] (!%p2258_p4)  ;;  %vm688_vm0 = vcmask (!%p2258_p4), 261120   ;;  %v685_v1 = vld [vmem:[%s3020_s1 + $0x8] sm:$0xff] (!%p2258_p4)  ;;  %s3050_s20 = sld [smem:[#allocation6_spill]] (!%p2258_p4) }
  0x17   : > { %s2301_s24 = sshll.u32 %s2684_s23, 4  ;;  %s672_s25 = scalar_lea.vmem %s3032_s13, %s2684_s23  ;;  %v689_v2 = vsel (!%p2258_p4), %vm688_vm0, %v684_v0, 0.0  ;;  %v692_v3 = vsel (!%p2258_p4), %vm688_vm0, %v685_v1, 0.0 }
  0x18   : > { %s675_s28 = scalar_lea.vmem %s3033_s14, %s2684_s23  ;;  %s678_s2 = scalar_lea.vmem %s3034_s15, %s2684_s23  ;;  %690 = vadd.xlane.f32.xlu0 (!%p2258_p4), %v689_v2 }
  0x19   : > { %s2694_s30 = scalar_lea.vmem %s3047_s4, %s2301_s24  ;;  %s2716_s4 = scalar_lea.vmem %s3029_s10, %s2301_s24 }
  0x1a   : > { %s2699_s18 = scalar_lea.vmem %s3048_s6, %s2301_s24  ;;  %s664_s6 = scalar_lea.vmem %s3030_s11, %s2684_s23 }
  0x1b   : > { %3049 = sst [smem:[#allocation4_spill]] %s2699_s18  ;;  %s2304_s18 = sshll.u32 %s2684_s23, 5 }
  0x1c   : > { %s2726_s21 = scalar_lea.vmem %s3031_s12, %s2304_s18  ;;  %693 = vadd.xlane.f32.xlu0 (!%p2258_p4), %v692_v3  ;;  %v2259_v21 = vld [vmem:[%s3050_s20] ss:$0 sm:$0xff] (!%p2258_p4)  ;;  %s3051_s26 = sld [smem:[#allocation7_spill]] (!%p2258_p4) }
  0x1d   : > { %s3052_s0 = sld [smem:[#allocation10_spill]] }
  0x22   : > { %v2260_v23 = vld [vmem:[%s3051_s26] ss:$0 sm:$0xff] }
  0xa5   : > { %v691_v4 = vpop.xlane.xlu0 %690 }
  0xa6   : > { %v696_v5 = vmul.f32 0.03125, %v691_v4 }
  0xa8   : > { %v698_v6 = vsub.f32 %v684_v0, %v696_v5 }
  0xa9   : > { %v694_v7 = vpop.xlane.xlu0 %693 }
  0xaa   : > { %v697_v8 = vmul.f32 0.03125, %v694_v7  ;;  %v700_v9 = vmul.f32 %v698_v6, %v698_v6 }
  0xac   : > { %v699_v10 = vsub.f32 %v685_v1, %v697_v8  ;;  %v702_v11 = vsel %vm688_vm0, %v700_v9, 0.0 }
  0xad   : > { %703 = vadd.xlane.f32.xlu1 %v702_v11 }
  0xae   : > { %v701_v12 = vmul.f32 %v699_v10, %v699_v10 }
  0xb0   : > { %v705_v13 = vsel %vm688_vm0, %v701_v12, 0.0 }
  0xb1   : > { %706 = vadd.xlane.f32.xlu1 %v705_v13 }
 0x13a   : > { %v704_v14 = vpop.xlane.xlu1 %703 }
 0x13b   : > { %v708_v15 = vmul.f32 0.03125, %v704_v14 }
 0x13d   : > { %v710_v16 = vadd.f32 1e-12, %v708_v15 }
 0x13e   : > { %v707_v17 = vpop.xlane.xlu1 %706 }
 0x13f   : > { %2508 = vrsqrt.f32 %v710_v16  ;;  %v709_v18 = vmul.f32 0.03125, %v707_v17 }
 0x141   : > { %v711_v19 = vadd.f32 1e-12, %v709_v18 }
 0x143   : > { %2510 = vrsqrt.f32 %v711_v19 }
 0x149   : > { %v2509_v20 = vpop.eup %2508 }
 0x14a   : > { %v714_v22 = vmul.f32 %v2509_v20, %v698_v6 }
 0x14c   : > { %v722_v24 = vmul.f32 %v2259_v21, %v714_v22 }
 0x14d   : > { %v2511_v25 = vpop.eup %2510 }
 0x14e   : > { %v730_v26 = vadd.f32 %v2260_v23, %v722_v24  ;;  %v715_v27 = vmul.f32 %v2511_v25, %v699_v10 }
 0x150   : > { %732 = vst.msk [vmem:[%s3052_s0] sm:$0xff] %vm688_vm0, %v730_v26  ;;  %v723_v28 = vmul.f32 %v2259_v21, %v715_v27 }
 0x152   : > { %v731_v29 = vadd.f32 %v2260_v23, %v723_v28 }
 0x154   : > { %733 = vst.msk [vmem:[%s3052_s0 + $0x8] sm:$0xff] %vm688_vm0, %v731_v29 }
 0x155 PF: > { %v2512_v30 = vld [vmem:[%s2694_s30] sm:$0xff]   ;;  %v2574_v31 = vmov 0.0   ;;  %v2513_v32 = vld [vmem:[%s2694_s30 + $0x8] sm:$0xff]   ;;  %vm2575_vm1 = vmmov 0   ;;  %s3053_s27 = sld [smem:[#allocation10_spill]]  ;;  %vm760_vm2 = vcmask 261120   ;;  %s3054_s26 = scalar_lea.vmem %s3024_s5, %s2684_s23  ;;  %v812_v51 = vlaneseq }
 0x156   : > { %2351 = vmatprep.subr.bf16.mxu0 %v2574_v31  ;;  %2359 = vmatprep.subr.bf16.mxu1 %v2574_v31  ;;  %v2261_v36 = vld [vmem:[%s3054_s26] ss:$0 sm:$0xff]  ;;  %s2576_s24 = smov 96   ;;  %vm836_vm3 = vcmask 64512   ;;  %v2577_v49 = vmov 1966171168  }
 0x157   : > { %2352 = vmatpush3.bf16.msra.mxu0 %v2512_v30  ;;  %2355 = vmatprep.mubr.msk.bf16.mxu0 %vm2575_vm1, %v2574_v31  ;;  %v810_v50 = vunpack.c.l.s4 %v2577_v49  ;;  %s3055_s17 = sld [smem:[#allocation5_spill]]  ;;  %v813_v55 = vshrl.u32 %v812_v51, 7  ;;  %s2578_s18 = smov 64   ;;  %vm975_vm4 = vcmask 1043456   ;;  %vm1301_vm5 = vcmask 130112  }
 0x158   : > { %2353 = vmatprep.subr.bf16.mxu0 %v2574_v31  ;;  %2361 = vmatprep.mubr.msk.bf16.mxu1 %vm2575_vm1, %v2574_v31  ;;  %s2579_s19 = smov 88   ;;  %s2580_s22 = smov 120   ;;  %vm1536_vm6 = vcmask 195712   ;;  %vm1771_vm7 = vcmask 261312   ;;  %vm2017_vm8 = vcmask 523264  }
 0x159   : > { %v811_v54 = vunpack.c.0.s8 %v810_v50  ;;  %v936_v60 = vsub.s32 0, %v813_v55  ;;  %s2581_s20 = smov 56   ;;  %s2582_s3 = smov 80  }
 0x15a   : > { %s2583_s30 = smov 112   ;;  %s2584_s16 = smov 48  }
 0x15b   : > { %v2773_v33 = vld [vmem:[%s3053_s27] sm:$0xff]  ;;  %v2778_v34 = vld [vmem:[%s3053_s27 + $0x8] sm:$0xff]  ;;  %2354 = vmatpush3.bf16.msra.mxu0 %v2513_v32  ;;  %v814_v57 = vsub.s32 %v811_v54, %v813_v55  ;;  %s2585_s26 = smov 72   ;;  %s2587_s29 = smov 40  }
 0x15c   : > { %v736_v35 = vpack.c.bf16 %v2778_v34, %v2773_v33  ;;  %2365 = vmatprep.subr.bf16.mxu0 %v2574_v31  ;;  %s2588_s0 = smov 8  }
 0x15d   : > { %v805_v52 = vld [vmem:[%s3055_s17] sm:$0x3]  ;;  %s2589_s17 = smov 16  }
 0x15e   : > { %2356 = vmatmul.mubr.msk.bf16.vlgmr.msra.gmra.mrb[0].mxu0 %vm760_vm2, %v736_v35  ;;  %v806_v53 = vsub.f32 1.0, %v805_v52 }
 0x15f   : > { %2367 = vmatprep.mubr.msk.bf16.mxu0 %vm2575_vm1, %v2574_v31 }
 0x160   : > { %v807_v56 = vmul.f32 -10000.0, %v806_v53 }
 0x162   : > { %v815_v58 = vrot.slane %v807_v56, %v814_v57 }
 0x164   : > { %v823_v59 = vrot.slane %v815_v58, %v814_v57  ;;  %v816_v61 = vcombine.high %v815_v58, %v815_v58 }
 0x166   : > { %v2815_v62 = vrot.slane %v823_v59, %v936_v60  ;;  %v830_v63 = vrot.slane %v816_v61, %v814_v57 }
 0x168   : > { %v2818_v6 = vrot.slane %v830_v63, %v936_v60 }
 0x231   : > { %v798_v37 = vpop.f32.mrb[0].mxu0 }
 0x232   : > { %v799_v38 = vadd.f32 %v2261_v36, %v798_v37  ;;  %v2357_v39 = vpop.f32.mrb[1].mxu0 }
 0x233   : > { %v801_v40 = vpop.f32.mrb[2].mxu0 }
 0x234   : > { %v2794_v41 = vpack.c.bf16 %v799_v38, %v799_v38  ;;  %v802_v42 = vadd.f32 %v2261_v36, %v801_v40  ;;  %v2358_v43 = vpop.f32.mrb[3].mxu0 }
 0x236   : > { %834 = vrot.lane.b32.xlu0 %v2794_v41, %s2576_s24  ;;  %v2797_v44 = vpack.c.bf16 %v802_v42, %v802_v42 }
 0x23a   : > { %884 = vrot.lane.b32.xlu0 %v2797_v44, %s2576_s24  ;;  %s2586_s24 = smov 104  }
 0x2a8   : > { %v835_v45 = vpop.permute.xlu0 %834 }
 0x2a9   : > { %v841_v46 = vsel %vm836_vm3, %v835_v45, 0 }
 0x2aa   : > { %2360 = vmatpush3.bf16.xpose.msra.mxu1 %v841_v46 }
 0x2ab   : > { %2371 = vmatprep.subr.bf16.mxu1 %v2574_v31 }
 0x2ac   : > { %v885_v47 = vpop.permute.xlu0 %884 }
 0x2ad   : > { %v890_v48 = vsel %vm836_vm3, %v885_v47, 0 }
 0x2ae   : > { %2366 = vmatpush3.bf16.xpose.msra.mxu0 %v890_v48 }
 0x2af   : > { %2377 = vmatprep.subr.bf16.mxu0 %v2574_v31 }
 0x2b1   : > { %2362 = vmatmul.mubr.msk.bf16.vlgmr.msra.gmra.mrb[0].mxu1 %vm836_vm3, %v2794_v41 }
 0x2b2   : > { %2373 = vmatprep.mubr.msk.bf16.mxu1 %vm2575_vm1, %v2574_v31 }
 0x2b5   : > { %2368 = vmatmul.mubr.msk.bf16.vlgmr.msra.gmra.mrb[4].mxu0 %vm836_vm3, %v2797_v44 }
 0x2b6   : > { %2379 = vmatprep.mubr.msk.bf16.mxu0 %vm2575_vm1, %v2574_v31 }
 0x384   : > { %v877_v0 = vpop.f32.mrb[0].mxu1 }
 0x385   : > { %v932_v1 = vmul.f32 0.35355338, %v877_v0  ;;  %v2363_v2 = vpop.f32.mrb[1].mxu1 }
 0x386   : > { %v880_v3 = vpop.f32.mrb[2].mxu1 }
 0x387   : > { %v2364_v4 = vpop.f32.mrb[3].mxu1  ;;  %v944_v5 = vadd.f32 %v2815_v62, %v932_v1 }
 0x388   : > { %v926_v7 = vpop.f32.mrb[4].mxu0 }
 0x389   : > { %v933_v8 = vmul.f32 0.35355338, %v926_v7  ;;  %v2369_v9 = vpop.f32.mrb[5].mxu0  ;;  %v946_v10 = vsel %vm836_vm3, %v944_v5, -inf }
 0x38a   : > { %947 = vmax.xlane.f32.xlu1 %v946_v10  ;;  %v929_v11 = vpop.f32.mrb[6].mxu0 }
 0x38b   : > { %v2370_v12 = vpop.f32.mrb[7].mxu0  ;;  %v945_v13 = vadd.f32 %v2818_v6, %v933_v8 }
 0x38d   : > { %v949_v14 = vsel %vm836_vm3, %v945_v13, -inf }
 0x38e   : > { %950 = vmax.xlane.f32.xlu1 %v949_v14 }
 0x39f   : > { %970 = vrot.lane.b32.xlu1 %v2794_v41, %s2578_s18 }
 0x3a3   : > { %1019 = vrot.lane.b32.xlu1 %v2797_v44, %s2578_s18  ;;  %s3056_s18 = sld [smem:[#allocation4_spill]] }
 0x3a7   : > { %1071 = vrot.lane.b32.xlu1 %v2794_v41, %s2579_s19 }
 0x417   : > { %v948_v15 = vpop.xlane.xlu1 %947 }
 0x418   : > { %v952_v16 = vsub.f32 %v944_v5, %v948_v15 }
 0x41a   : > { %v954_v17 = vmul.f32 1.442695, %v952_v16 }
 0x41b   : > { %v951_v18 = vpop.xlane.xlu1 %950 }
 0x41c   : > { %2522 = vpow2.f32 %v954_v17  ;;  %v953_v19 = vsub.f32 %v945_v13, %v951_v18 }
 0x41e   : > { %v956_v20 = vmul.f32 1.442695, %v953_v19 }
 0x41f   : > { %v971_v21 = vpop.permute.xlu1 %970 }
 0x420   : > { %2524 = vpow2.f32 %v956_v20  ;;  %v977_v22 = vsel %vm975_vm4, %v971_v21, 0 }
 0x421   : > { %2372 = vmatpush3.bf16.msra.mxu1 %v977_v22 }
 0x422   : > { %2383 = vmatprep.subr.bf16.mxu1 %v2574_v31 }
 0x423   : > { %v1020_v23 = vpop.permute.xlu1 %1019 }
 0x424   : > { %v1025_v24 = vsel %vm975_vm4, %v1020_v23, 0 }
 0x425   : > { %2378 = vmatpush3.bf16.msra.mxu0 %v1025_v24 }
 0x426   : > { %v2523_v25 = vpop.eup %2522  ;;  %2389 = vmatprep.subr.bf16.mxu0 %v2574_v31 }
 0x427   : > { %v958_v26 = vsel %vm836_vm3, %v2523_v25, 0.0  ;;  %v1072_v29 = vpop.permute.xlu1 %1071 }
 0x428   : > { %959 = vadd.xlane.f32.xlu0 %v958_v26  ;;  %v1077_v39 = vsel %vm836_vm3, %v1072_v29, 0 }
 0x42a   : > { %v2525_v27 = vpop.eup %2524 }
 0x42b   : > { %v961_v28 = vsel %vm836_vm3, %v2525_v27, 0.0 }
 0x42c   : > { %962 = vadd.xlane.f32.xlu1 %v961_v28 }
 0x43d   : > { %1121 = vrot.lane.b32.xlu1 %v2797_v44, %s2579_s19  ;;  %s2590_s19 = smov 24  }
 0x43e   : > { %1069 = vrot.lane.b32.xlu0 %v2794_v41, %s2580_s22 }
 0x441   : > { %1119 = vrot.lane.b32.xlu1 %v2797_v44, %s2580_s22 }
 0x4b5   : > { %v960_v30 = vpop.xlane.xlu0 %959 }
 0x4b6   : > { %2526 = vrcp.f32 %v960_v30 }
 0x4b9   : > { %v963_v32 = vpop.xlane.xlu1 %962  ;;  %v1070_v46 = vpop.permute.xlu0 %1069 }
 0x4ba   : > { %2528 = vrcp.f32 %v963_v32 }
 0x4bd   : > { %v1122_v42 = vpop.permute.xlu1 %1121 }
 0x4be   : > { %v1127_v45 = vsel %vm836_vm3, %v1122_v42, 0 }
 0x4c0   : > { %v2527_v35 = vpop.eup %2526 }
 0x4c1   : > { %v966_v36 = vmul.f32 %v2527_v35, %v2523_v25  ;;  %v1120_v47 = vpop.permute.xlu1 %1119 }
 0x4c3   : > { %v968_v37 = vpack.c.bf16 %v966_v36, %v966_v36 }
 0x4c4   : > { %v2529_v38 = vpop.eup %2528 }
 0x4c5   : > { %v967_v40 = vmul.f32 %v2529_v38, %v2525_v27  ;;  %2374 = vmatmul.mubr.msk.bf16.vlgmr.msra.gmra.mrb[4].mxu1 %vm836_vm3, %v968_v37 }
 0x4c6   : > { %2384 = vmatpush3.bf16.xpose.msra.mxu1 %v1077_v39  ;;  %2385 = vmatprep.mubr.msk.bf16.mxu1 %vm2575_vm1, %v2574_v31 }
 0x4c7   : > { %v969_v43 = vpack.c.bf16 %v967_v40, %v967_v40  ;;  %2395 = vmatprep.subr.bf16.mxu1 %v2574_v31 }
 0x4c9   : > { %2380 = vmatmul.mubr.msk.bf16.vlgmr.msra.gmra.mrb[8].mxu0 %vm836_vm3, %v969_v43 }
 0x4ca   : > { %2390 = vmatpush3.bf16.xpose.msra.mxu0 %v1127_v45  ;;  %2391 = vmatprep.mubr.msk.bf16.mxu0 %vm2575_vm1, %v2574_v31 }
 0x4cb   : > { %2401 = vmatprep.subr.bf16.mxu0 %v2574_v31 }
 0x4cd   : > { %2386 = vmatmul.mubr.msk.bf16.vlgmr.msra.gmra.mrb[8].mxu1 %vm836_vm3, %v1070_v46 }
 0x4ce   : > { %2397 = vmatprep.mubr.msk.bf16.mxu1 %vm2575_vm1, %v2574_v31 }
 0x4d1   : > { %2392 = vmatmul.mubr.msk.bf16.vlgmr.msra.gmra.mrb[12].mxu0 %vm836_vm3, %v1120_v47 }
 0x4d2   : > { %2403 = vmatprep.mubr.msk.bf16.mxu0 %vm2575_vm1, %v2574_v31 }
 0x598   : > { %v1013_v48 = vpop.f32.mrb[4].mxu1 }
 0x599   : > { %1067 = vst.msk [vmem:[#allocation2] sm:$0xff] %vm836_vm3, %v1013_v48  ;;  %v2375_v49 = vpop.f32.mrb[5].mxu1 }
 0x59a   : > { %v1016_v50 = vpop.f32.mrb[6].mxu1 }
 0x59b   : > { %v2376_v51 = vpop.f32.mrb[7].mxu1 }
 0x59c   : > { %v1061_v52 = vpop.f32.mrb[8].mxu0 }
 0x59d   : > { %1068 = vst.msk [vmem:[#allocation2 + $0x8] sm:$0xff] %vm836_vm3, %v1061_v52  ;;  %v2381_v53 = vpop.f32.mrb[9].mxu0 }
 0x59e   : > { %v1064_v54 = vpop.f32.mrb[10].mxu0 }
 0x59f   : > { %v2382_v55 = vpop.f32.mrb[11].mxu0 }
 0x5a0   : > { %v1113_v56 = vpop.f32.mrb[8].mxu1 }
 0x5a1   : > { %v1169_v57 = vmul.f32 0.35355338, %v1113_v56  ;;  %v2387_v58 = vpop.f32.mrb[9].mxu1 }
 0x5a2   : > { %v1116_v59 = vpop.f32.mrb[10].mxu1 }
 0x5a3   : > { %v2388_v60 = vpop.f32.mrb[11].mxu1  ;;  %v1171_v61 = vadd.f32 %v1169_v57, %v2815_v62 }
 0x5a4   : > { %v1163_v63 = vpop.f32.mrb[12].mxu0 }
 0x5a5   : > { %v1170_v0 = vmul.f32 0.35355338, %v1163_v63  ;;  %v2393_v1 = vpop.f32.mrb[13].mxu0  ;;  %v1173_v2 = vsel %vm836_vm3, %v1171_v61, -inf }
 0x5a6   : > { %1174 = vmax.xlane.f32.xlu1 %v1173_v2  ;;  %v1166_v3 = vpop.f32.mrb[14].mxu0 }
 0x5a7   : > { %v2394_v4 = vpop.f32.mrb[15].mxu0  ;;  %v1172_v5 = vadd.f32 %v1170_v0, %v2818_v6 }
 0x5a9   : > { %v1176_v7 = vsel %vm836_vm3, %v1172_v5, -inf }
 0x5aa   : > { %1177 = vmax.xlane.f32.xlu0 %v1176_v7 }
 0x5b7   : > { %1197 = vrot.lane.b32.xlu1 %v2794_v41, %s2581_s20 }
 0x5bb   : > { %1306 = vrot.lane.b32.xlu1 %v2794_v41, %s2582_s3 }
 0x5c0   : > { %1245 = vrot.lane.b32.xlu0 %v2797_v44, %s2581_s20 }
 0x5c4   : > { %1304 = vrot.lane.b32.xlu0 %v2794_v41, %s2583_s30 }
 0x633   : > { %v1175_v8 = vpop.xlane.xlu1 %1174 }
 0x634   : > { %v1179_v9 = vsub.f32 %v1171_v61, %v1175_v8 }
 0x636   : > { %v1181_v10 = vmul.f32 1.442695, %v1179_v9 }
 0x637   : > { %v1198_v11 = vpop.permute.xlu1 %1197  ;;  %v1178_v12 = vpop.xlane.xlu0 %1177 }
 0x638   : > { %2530 = vpow2.f32 %v1181_v10  ;;  %v1203_v13 = vsel %vm975_vm4, %v1198_v11, 0  ;;  %v1180_v14 = vsub.f32 %v1172_v5, %v1178_v12 }
 0x639   : > { %2396 = vmatpush3.bf16.msra.mxu1 %v1203_v13 }
 0x63a   : > { %v1183_v15 = vmul.f32 1.442695, %v1180_v14  ;;  %2407 = vmatprep.subr.bf16.mxu1 %v2574_v31 }
 0x63b   : > { %v1246_v16 = vpop.permute.xlu0 %1245  ;;  %v1307_v22 = vpop.permute.xlu1 %1306 }
 0x63c   : > { %2532 = vpow2.f32 %v1183_v15  ;;  %v1251_v17 = vsel %vm975_vm4, %v1246_v16, 0  ;;  %v1312_v29 = vsel %vm836_vm3, %v1307_v22, 0 }
 0x63d   : > { %2402 = vmatpush3.bf16.msra.mxu0 %v1251_v17 }
 0x63e   : > { %2413 = vmatprep.subr.bf16.mxu0 %v2574_v31 }
 0x63f   : > { %v1305_v37 = vpop.permute.xlu0 %1304 }
 0x642   : > { %v2531_v18 = vpop.eup %2530 }
 0x643   : > { %v1185_v19 = vsel %vm836_vm3, %v2531_v18, 0.0 }
 0x644   : > { %1186 = vadd.xlane.f32.xlu1 %v1185_v19 }
 0x646   : > { %v2533_v20 = vpop.eup %2532 }
 0x647   : > { %v1188_v21 = vsel %vm836_vm3, %v2533_v20, 0.0 }
 0x648   : > { %1189 = vadd.xlane.f32.xlu1 %v1188_v21 }
 0x659   : > { %1356 = vrot.lane.b32.xlu1 %v2797_v44, %s2582_s3  ;;  %s3057_s3 = scalar_lea.vmem %s3026_s7, %s2684_s23 }
 0x65d   : > { %1354 = vrot.lane.b32.xlu1 %v2797_v44, %s2583_s30 }
 0x6d1   : > { %v1187_v23 = vpop.xlane.xlu1 %1186 }
 0x6d2   : > { %2534 = vrcp.f32 %v1187_v23 }
 0x6d5   : > { %v1190_v24 = vpop.xlane.xlu1 %1189 }
 0x6d6   : > { %2536 = vrcp.f32 %v1190_v24 }
 0x6d9   : > { %v1357_v32 = vpop.permute.xlu1 %1356 }
 0x6da   : > { %v1362_v36 = vsel %vm836_vm3, %v1357_v32, 0 }
 0x6dc   : > { %v2535_v25 = vpop.eup %2534 }
 0x6dd   : > { %v1193_v26 = vmul.f32 %v2535_v25, %v2531_v18  ;;  %v1355_v38 = vpop.permute.xlu1 %1354 }
 0x6df   : > { %v1195_v27 = vpack.c.bf16 %v1193_v26, %v1193_v26 }
 0x6e0   : > { %v2537_v28 = vpop.eup %2536 }
 0x6e1   : > { %v1194_v30 = vmul.f32 %v2537_v28, %v2533_v20  ;;  %2398 = vmatmul.mubr.msk.bf16.vlgmr.msra.gmra.mrb[12].mxu1 %vm836_vm3, %v1195_v27 }
 0x6e2   : > { %2408 = vmatpush3.bf16.xpose.msra.mxu1 %v1312_v29  ;;  %2409 = vmatprep.mubr.msk.bf16.mxu1 %vm2575_vm1, %v2574_v31 }
 0x6e3   : > { %v1196_v35 = vpack.c.bf16 %v1194_v30, %v1194_v30  ;;  %2419 = vmatprep.subr.bf16.mxu1 %v2574_v31 }
 0x6e5   : > { %2404 = vmatmul.mubr.msk.bf16.vlgmr.msra.gmra.mrb[16].mxu0 %vm836_vm3, %v1196_v35 }
 0x6e6   : > { %2414 = vmatpush3.bf16.xpose.msra.mxu0 %v1362_v36  ;;  %2415 = vmatprep.mubr.msk.bf16.mxu0 %vm2575_vm1, %v2574_v31 }
 0x6e7   : > { %2425 = vmatprep.subr.bf16.mxu0 %v2574_v31 }
 0x6e9   : > { %2410 = vmatmul.mubr.msk.bf16.vlgmr.msra.gmra.mrb[16].mxu1 %vm836_vm3, %v1305_v37 }
 0x6ea   : > { %2421 = vmatprep.mubr.msk.bf16.mxu1 %vm2575_vm1, %v2574_v31 }
 0x6ed   : > { %2416 = vmatmul.mubr.msk.bf16.vlgmr.msra.gmra.mrb[20].mxu0 %vm836_vm3, %v1355_v38 }
 0x6ee   : > { %2427 = vmatprep.mubr.msk.bf16.mxu0 %vm2575_vm1, %v2574_v31 }
 0x7b4   : > { %v2885_v39 = vpop.f32.mrb[12].mxu1 }
 0x7b5   : > { %v2399_v40 = vpop.f32.mrb[13].mxu1 }
 0x7b6   : > { %v1242_v42 = vpop.f32.mrb[14].mxu1 }
 0x7b7   : > { %v2400_v43 = vpop.f32.mrb[15].mxu1 }
 0x7b8   : > { %v2887_v45 = vpop.f32.mrb[16].mxu0 }
 0x7b9   : > { %v2405_v46 = vpop.f32.mrb[17].mxu0 }
 0x7ba   : > { %v1290_v47 = vpop.f32.mrb[18].mxu0 }
 0x7bb   : > { %v2406_v48 = vpop.f32.mrb[19].mxu0 }
 0x7bc   : > { %v1348_v49 = vpop.f32.mrb[16].mxu1 }
 0x7bd   : > { %v1404_v50 = vmul.f32 0.35355338, %v1348_v49  ;;  %v2411_v51 = vpop.f32.mrb[17].mxu1 }
 0x7be   : > { %v1351_v52 = vpop.f32.mrb[18].mxu1 }
 0x7bf   : > { %v2412_v53 = vpop.f32.mrb[19].mxu1  ;;  %v1406_v54 = vadd.f32 %v1404_v50, %v2815_v62 }
 0x7c0   : > { %v1398_v55 = vpop.f32.mrb[20].mxu0 }
 0x7c1   : > { %v1405_v56 = vmul.f32 0.35355338, %v1398_v55  ;;  %v2417_v57 = vpop.f32.mrb[21].mxu0  ;;  %v1408_v58 = vsel %vm836_vm3, %v1406_v54, -inf }
 0x7c2   : > { %1409 = vmax.xlane.f32.xlu0 %v1408_v58  ;;  %v1401_v59 = vpop.f32.mrb[22].mxu0 }
 0x7c3   : > { %v2418_v60 = vpop.f32.mrb[23].mxu0  ;;  %v1407_v61 = vadd.f32 %v1405_v56, %v2818_v6 }
 0x7c5   : > { %v1411_v63 = vsel %vm836_vm3, %v1407_v61, -inf }
 0x7c6   : > { %1412 = vmax.xlane.f32.xlu1 %v1411_v63 }
 0x7d7   : > { %1432 = vrot.lane.b32.xlu1 %v2794_v41, %s2584_s16 }
 0x7db   : > { %1541 = vrot.lane.b32.xlu1 %v2794_v41, %s2585_s26 }
 0x7df   : > { %1591 = vrot.lane.b32.xlu1 %v2797_v44, %s2585_s26 }
 0x7e3   : > { %1589 = vrot.lane.b32.xlu1 %v2797_v44, %s2586_s24 }
 0x84f   : > { %v1410_v0 = vpop.xlane.xlu0 %1409 }
 0x850   : > { %v1414_v1 = vsub.f32 %v1406_v54, %v1410_v0 }
 0x852   : > { %v1416_v2 = vmul.f32 1.442695, %v1414_v1 }
 0x853   : > { %v1413_v3 = vpop.xlane.xlu1 %1412 }
 0x854   : > { %2538 = vpow2.f32 %v1416_v2  ;;  %v1415_v4 = vsub.f32 %v1407_v61, %v1413_v3 }
 0x856   : > { %v1418_v5 = vmul.f32 1.442695, %v1415_v4 }
 0x857   : > { %v1433_v7 = vpop.permute.xlu1 %1432 }
 0x858   : > { %2540 = vpow2.f32 %v1418_v5  ;;  %v1438_v8 = vsel %vm975_vm4, %v1433_v7, 0 }
 0x859   : > { %2420 = vmatpush3.bf16.msra.mxu1 %v1438_v8 }
 0x85a   : > { %2431 = vmatprep.subr.bf16.mxu1 %v2574_v31 }
 0x85b   : > { %v1542_v18 = vpop.permute.xlu1 %1541 }
 0x85c   : > { %v1547_v22 = vsel %vm836_vm3, %v1542_v18, 0 }
 0x85e   : > { %v2539_v9 = vpop.eup %2538 }
 0x85f   : > { %v1420_v10 = vsel %vm836_vm3, %v2539_v9, 0.0  ;;  %v1592_v24 = vpop.permute.xlu1 %1591 }
 0x860   : > { %1421 = vadd.xlane.f32.xlu0 %v1420_v10  ;;  %v1597_v26 = vsel %vm836_vm3, %v1592_v24, 0 }
 0x862   : > { %v2541_v11 = vpop.eup %2540 }
 0x863   : > { %v1423_v12 = vsel %vm836_vm3, %v2541_v11, 0.0  ;;  %v1590_v28 = vpop.permute.xlu1 %1589 }
 0x864   : > { %1424 = vadd.xlane.f32.xlu0 %v1423_v12 }
 0x87a   : > { %1480 = vrot.lane.b32.xlu0 %v2797_v44, %s2584_s16 }
 0x87e   : > { %1539 = vrot.lane.b32.xlu0 %v2794_v41, %s2586_s24 }
 0x8ed   : > { %v1422_v13 = vpop.xlane.xlu0 %1421 }
 0x8ee   : > { %2542 = vrcp.f32 %v1422_v13 }
 0x8f1   : > { %v1425_v14 = vpop.xlane.xlu0 %1424 }
 0x8f2   : > { %2544 = vrcp.f32 %v1425_v14 }
 0x8f5   : > { %v1481_v15 = vpop.permute.xlu0 %1480 }
 0x8f6   : > { %v1486_v16 = vsel %vm975_vm4, %v1481_v15, 0 }
 0x8f7   : > { %2426 = vmatpush3.bf16.msra.mxu0 %v1486_v16  ;;  %v2514_v16 = vld [vmem:[%s3056_s18] sm:$0xff]  }
 0x8f8   : > { %v2543_v17 = vpop.eup %2542  ;;  %2437 = vmatprep.subr.bf16.mxu0 %v2574_v31 }
 0x8f9   : > { %v1428_v19 = vmul.f32 %v2543_v17, %v2539_v9  ;;  %v1540_v27 = vpop.permute.xlu0 %1539  ;;  %v2515_v17 = vld [vmem:[%s3056_s18 + $0x8] sm:$0xff]  }
 0x8fb   : > { %v1430_v20 = vpack.c.bf16 %v1428_v19, %v1428_v19 }
 0x8fc   : > { %v2545_v21 = vpop.eup %2544 }
 0x8fd   : > { %v1429_v23 = vmul.f32 %v2545_v21, %v2541_v11  ;;  %2422 = vmatmul.mubr.msk.bf16.vlgmr.msra.gmra.mrb[20].mxu1 %vm836_vm3, %v1430_v20 }
 0x8fe   : > { %2432 = vmatpush3.bf16.xpose.msra.mxu1 %v1547_v22  ;;  %2433 = vmatprep.mubr.msk.bf16.mxu1 %vm2575_vm1, %v2574_v31 }
 0x8ff   : > { %v1431_v25 = vpack.c.bf16 %v1429_v23, %v1429_v23  ;;  %2443 = vmatprep.subr.bf16.mxu1 %v2574_v31 }
 0x901   : > { %2428 = vmatmul.mubr.msk.bf16.vlgmr.msra.gmra.mrb[24].mxu0 %vm836_vm3, %v1431_v25 }
 0x902   : > { %2438 = vmatpush3.bf16.xpose.msra.mxu0 %v1597_v26  ;;  %2439 = vmatprep.mubr.msk.bf16.mxu0 %vm2575_vm1, %v2574_v31 }
 0x903   : > { %2449 = vmatprep.subr.bf16.mxu0 %v2574_v31 }
 0x905   : > { %2434 = vmatmul.mubr.msk.bf16.vlgmr.msra.gmra.mrb[24].mxu1 %vm836_vm3, %v1540_v27 }
 0x906   : > { %2445 = vmatprep.mubr.msk.bf16.mxu1 %vm2575_vm1, %v2574_v31 }
 0x909   : > { %2440 = vmatmul.mubr.msk.bf16.vlgmr.msra.gmra.mrb[28].mxu0 %vm836_vm3, %v1590_v28 }
 0x90a   : > { %2451 = vmatprep.mubr.msk.bf16.mxu0 %vm2575_vm1, %v2574_v31 }
 0x9d0   : > { %v1474_v29 = vpop.f32.mrb[20].mxu1 }
 0x9d1   : > { %v2423_v30 = vpop.f32.mrb[21].mxu1 }
 0x9d2   : > { %v1477_v32 = vpop.f32.mrb[22].mxu1 }
 0x9d3   : > { %v2424_v35 = vpop.f32.mrb[23].mxu1  ;;  %v2281_v32 = vld [vmem:[%s3057_s3] ss:$0 sm:$0xff] }
 0x9d4   : > { %v1522_v36 = vpop.f32.mrb[24].mxu0 }
 0x9d5   : > { %v2429_v37 = vpop.f32.mrb[25].mxu0 }
 0x9d6   : > { %v1525_v38 = vpop.f32.mrb[26].mxu0 }
 0x9d7   : > { %v2430_v40 = vpop.f32.mrb[27].mxu0 }
 0x9d8   : > { %v1583_v42 = vpop.f32.mrb[24].mxu1 }
 0x9d9   : > { %v1639_v43 = vmul.f32 0.35355338, %v1583_v42  ;;  %v2435_v46 = vpop.f32.mrb[25].mxu1 }
 0x9da   : > { %v1586_v47 = vpop.f32.mrb[26].mxu1 }
 0x9db   : > { %v2436_v48 = vpop.f32.mrb[27].mxu1  ;;  %v1641_v49 = vadd.f32 %v1639_v43, %v2815_v62 }
 0x9dc   : > { %v1633_v50 = vpop.f32.mrb[28].mxu0 }
 0x9dd   : > { %v1640_v51 = vmul.f32 0.35355338, %v1633_v50  ;;  %v2441_v52 = vpop.f32.mrb[29].mxu0  ;;  %v1643_v53 = vsel %vm836_vm3, %v1641_v49, -inf }
 0x9de   : > { %1644 = vmax.xlane.f32.xlu0 %v1643_v53  ;;  %v1636_v54 = vpop.f32.mrb[30].mxu0 }
 0x9df   : > { %v2442_v55 = vpop.f32.mrb[31].mxu0  ;;  %v1642_v56 = vadd.f32 %v1640_v51, %v2818_v6 }
 0x9e1   : > { %v1646_v57 = vsel %vm836_vm3, %v1642_v56, -inf }
 0x9e2   : > { %1647 = vmax.xlane.f32.xlu1 %v1646_v57 }
 0x9f3   : > { %1667 = vrot.lane.b32.xlu1 %v2794_v41, %s2587_s29 }
 0x9f7   : > { %1295 = vrot.lane.b32.xlu1 %v2885_v39, %s2588_s0 }
 0x9fb   : > { %1297 = vrot.lane.b32.xlu1 %v2887_v45, %s2588_s0 }
 0x9ff   : > { %1532 = vrot.lane.b32.xlu1 %v1522_v36, %s2589_s17 }
 0xa6b   : > { %v1645_v62 = vpop.xlane.xlu0 %1644 }
 0xa6c   : > { %v1649_v58 = vsub.f32 %v1641_v49, %v1645_v62  ;;  %v2517_v62 = vld [vmem:[%s2716_s4 + $0x8] sm:$0xff]  }
 0xa6e   : > { %v1651_v59 = vmul.f32 1.442695, %v1649_v58 }
 0xa6f   : > { %v1648_v60 = vpop.xlane.xlu1 %1647 }
 0xa70   : > { %2546 = vpow2.f32 %v1651_v59  ;;  %v1650_v6 = vsub.f32 %v1642_v56, %v1648_v60 }
 0xa72   : > { %v1653_v61 = vmul.f32 1.442695, %v1650_v6 }
 0xa73   : > { %v1668_v63 = vpop.permute.xlu1 %1667 }
 0xa74   : > { %2548 = vpow2.f32 %v1653_v61  ;;  %v1673_v0 = vsel %vm975_vm4, %v1668_v63, 0 }
 0xa75   : > { %2444 = vmatpush3.bf16.msra.mxu1 %v1673_v0 }
 0xa76   : > { %2455 = vmatprep.subr.bf16.mxu1 %v2574_v31 }
 0xa77   : > { %v1296_v41 = vpop.permute.xlu1 %1295 }
 0xa78   : > { %1302 = vst.msk [vmem:[#allocation2] sm:$0xff] %vm1301_vm5, %v1296_v41 }
 0xa7a   : > { %v2547_v39 = vpop.eup %2546 }
 0xa7b   : > { %v1298_v45 = vpop.permute.xlu1 %1297  ;;  %v1655_v1 = vsel %vm836_vm3, %v2547_v39, 0.0 }
 0xa7c   : > { %1303 = vst.msk [vmem:[#allocation2 + $0x8] sm:$0xff] %vm1301_vm5, %v1298_v45  ;;  %1656 = vadd.xlane.f32.xlu0 %v1655_v1 }
 0xa7e   : > { %v2549_v2 = vpop.eup %2548 }
 0xa7f   : > { %v1533_v3 = vpop.permute.xlu1 %1532  ;;  %v1658_v4 = vsel %vm836_vm3, %v2549_v2, 0.0 }
 0xa80   : > { %1538 = vst.msk [vmem:[#allocation2 + $0x8] sm:$0xff] %vm1536_vm6, %v1533_v3  ;;  %1659 = vadd.xlane.f32.xlu0 %v1658_v4 }
 0xa96   : > { %1715 = vrot.lane.b32.xlu0 %v2797_v44, %s2587_s29  ;;  %s3059_s29 = scalar_lea.vmem %s3028_s9, %s2684_s23 }
 0xa97   : > { %v2286_v3 = vld [vmem:[%s3059_s29] ss:$0 sm:$0xff] }
 0xa9a   : > { %1530 = vrot.lane.b32.xlu0 %v1474_v29, %s2589_s17 }
 0xb09   : > { %v1657_v5 = vpop.xlane.xlu0 %1656 }
 0xb0a   : > { %2550 = vrcp.f32 %v1657_v5 }
 0xb0d   : > { %v1660_v7 = vpop.xlane.xlu0 %1659 }
 0xb0e   : > { %2552 = vrcp.f32 %v1660_v7 }
 0xb11   : > { %v1716_v8 = vpop.permute.xlu0 %1715 }
 0xb12   : > { %v1721_v9 = vsel %vm975_vm4, %v1716_v8, 0 }
 0xb13   : > { %2450 = vmatpush3.bf16.msra.mxu0 %v1721_v9  ;;  %v2518_v9 = vld [vmem:[%s2726_s21] sm:$0xff]  }
 0xb14   : > { %v2551_v10 = vpop.eup %2550  ;;  %2463 = vmatprep.subr.bf16.mxu0 %v2574_v31 }
 0xb15   : > { %v1663_v11 = vmul.f32 %v2551_v10, %v2547_v39  ;;  %v1531_v12 = vpop.permute.xlu0 %1530  ;;  %v2519_v10 = vld [vmem:[%s2726_s21 + $0x8] sm:$0xff]  }
 0xb16   : > { %1537 = vst.msk [vmem:[#allocation2] sm:$0xff] %vm1536_vm6, %v1531_v12  ;;  %v2521_v12 = vld [vmem:[%s2726_s21 + $0x18] sm:$0xff]  }
 0xb17   : > { %v1665_v13 = vpack.c.bf16 %v1663_v11, %v1663_v11  ;;  %v2520_v11 = vld [vmem:[%s2726_s21 + $0x10] sm:$0xff]  }
 0xb18   : > { %v2553_v44 = vpop.eup %2552 }
 0xb19   : > { %v1664_v14 = vmul.f32 %v2553_v44, %v2549_v2  ;;  %2446 = vmatmul.mubr.msk.bf16.vlgmr.msra.gmra.mrb[28].mxu1 %vm836_vm3, %v1665_v13  ;;  %v2287_v13 = vld [vmem:[%s664_s6] ss:$0 sm:$0xff] }
 0xb1a   : > { %2459 = vmatprep.mubr.msk.bf16.mxu1 %vm2575_vm1, %v2574_v31  ;;  %2456 = vmatpush3.bf16.msra.mxu1 %v2514_v16 }
 0xb1b   : > { %v1666_v15 = vpack.c.bf16 %v1664_v14, %v1664_v14  ;;  %2457 = vmatprep.subr.bf16.mxu1 %v2574_v31 }
 0xb1d   : > { %2452 = vmatmul.mubr.msk.bf16.vlgmr.msra.gmra.mrb[32].mxu0 %vm836_vm3, %v1666_v15 }
 0xb1e   : > { %2467 = vmatprep.mubr.msk.bf16.mxu0 %vm2575_vm1, %v2574_v31  ;;  %2458 = vmatpush3.bf16.msra.mxu1 %v2515_v17 }
 0xb1f   : > { %2471 = vmatprep.subr.bf16.mxu1 %v2574_v31 }
 0xbec   : > { %v1709_v18 = vpop.f32.mrb[28].mxu1 }
 0xbed   : > { %1765 = vrot.lane.b32.xlu0 %v1709_v18, %s2590_s19  ;;  %v2447_v19 = vpop.f32.mrb[29].mxu1 }
 0xbee   : > { %v1712_v20 = vpop.f32.mrb[30].mxu1 }
 0xbef   : > { %v2448_v21 = vpop.f32.mrb[31].mxu1 }
 0xbf0   : > { %v1757_v22 = vpop.f32.mrb[32].mxu0 }
 0xbf1   : > { %1767 = vrot.lane.b32.xlu1 %v1757_v22, %s2590_s19  ;;  %v2453_v23 = vpop.f32.mrb[33].mxu0 }
 0xbf2   : > { %v1760_v24 = vpop.f32.mrb[34].mxu0 }
 0xbf3   : > { %v2454_v25 = vpop.f32.mrb[35].mxu0 }
 0xc5f   : > { %v1766_v26 = vpop.permute.xlu0 %1765 }
 0xc60   : > { %1772 = vst.msk [vmem:[#allocation2] sm:$0xff] %vm1771_vm7, %v1766_v26 }
 0xc63   : > { %v1768_v27 = vpop.permute.xlu1 %1767 }
 0xc64   : > { %1773 = vst.msk [vmem:[#allocation2 + $0x8] sm:$0xff] %vm1771_vm7, %v1768_v27 }
 0xc67   : > { %v1774_v28 = vld [vmem:[#allocation2] sm:$0xff] }
 0xc6b   : > { %v1775_v29 = vld [vmem:[#allocation2 + $0x8] sm:$0xff] }
 0xc6c   : > { %v1776_v30 = vpack.c.bf16 %v1775_v29, %v1774_v28 }
 0xc6e   : > { %2460 = vmatmul.mubr.msk.bf16.vlgmr.msra.gmra.mrb[32].mxu1 %vm760_vm2, %v1776_v30 }
 0xc6f   : > { %2479 = vmatprep.mubr.msk.bf16.mxu1 %vm2575_vm1, %v2574_v31  ;;  %2472 = vmatpush3.bf16.msra.mxu1 %v2518_v9 }
 0xc70   : > { %2473 = vmatprep.subr.bf16.mxu1 %v2574_v31 }
 0xc73   : > { %2474 = vmatpush3.bf16.msra.mxu1 %v2519_v10 }
 0xc74   : > { %2475 = vmatprep.subr.bf16.mxu1 %v2574_v31 }
 0xc77   : > { %2476 = vmatpush3.bf16.msra.mxu1 %v2520_v11 }
 0xc78   : > { %2477 = vmatprep.subr.bf16.mxu1 %v2574_v31 }
 0xc7b   : > { %2478 = vmatpush3.bf16.msra.mxu1 %v2521_v12 }
 0xd41   : > { %v1837_v35 = vpop.f32.mrb[32].mxu1 }
 0xd42   : > { %v1838_v36 = vadd.f32 %v2281_v32, %v1837_v35  ;;  %v2461_v37 = vpop.f32.mrb[33].mxu1 }
 0xd43   : > { %v1840_v38 = vpop.f32.mrb[34].mxu1 }
 0xd44   : > { %v1841_v40 = vadd.f32 %v2281_v32, %v1840_v38  ;;  %v2462_v42 = vpop.f32.mrb[35].mxu1  ;;  %v1844_v43 = vadd.f32 %v1838_v36, %v2773_v33 }
 0xd45   : > { %v2291_v42 = vld [vmem:[%s672_s25] ss:$0 sm:$0xff] }
 0xd46   : > { %v1848_v46 = vsel %vm760_vm2, %v1844_v43, 0.0  ;;  %v1845_v47 = vadd.f32 %v1841_v40, %v2778_v34  ;;  %v2516_v34 = vld [vmem:[%s2716_s4] sm:$0xff]   ;;  %s3058_s4 = scalar_lea.vmem %s3027_s8, %s2684_s23 }
 0xd47   : > { %1849 = vadd.xlane.f32.xlu0 %v1848_v46  ;;  %2464 = vmatpush3.bf16.msra.mxu0 %v2516_v34  ;;  %v2285_v39 = vld [vmem:[%s3058_s4] ss:$0 sm:$0xff] }
 0xd48   : > { %v1851_v48 = vsel %vm760_vm2, %v1845_v47, 0.0  ;;  %2465 = vmatprep.subr.bf16.mxu0 %v2574_v31 }
 0xd49   : > { %1852 = vadd.xlane.f32.xlu1 %v1851_v48 }
 0xd4b   : > { %2466 = vmatpush3.bf16.msra.mxu0 %v2517_v62 }
 0xdd4   : > { %v1850_v49 = vpop.xlane.xlu0 %1849 }
 0xdd5   : > { %v1855_v50 = vmul.f32 0.03125, %v1850_v49 }
 0xdd6   : > { %v1853_v51 = vpop.xlane.xlu1 %1852 }
 0xdd7   : > { %v1857_v52 = vsub.f32 %v1844_v43, %v1855_v50  ;;  %v1856_v53 = vmul.f32 0.03125, %v1853_v51 }
 0xdd9   : > { %v1858_v54 = vsub.f32 %v1845_v47, %v1856_v53  ;;  %v1859_v55 = vmul.f32 %v1857_v52, %v1857_v52 }
 0xddb   : > { %v1861_v56 = vsel %vm760_vm2, %v1859_v55, 0.0  ;;  %v1860_v33 = vmul.f32 %v1858_v54, %v1858_v54 }
 0xddc   : > { %1862 = vadd.xlane.f32.xlu0 %v1861_v56 }
 0xddd   : > { %v1864_v57 = vsel %vm760_vm2, %v1860_v33, 0.0 }
 0xde0   : > { %1865 = vadd.xlane.f32.xlu0 %v1864_v57 }
 0xe69   : > { %v1863_v58 = vpop.xlane.xlu0 %1862 }
 0xe6a   : > { %v1867_v59 = vmul.f32 0.03125, %v1863_v58 }
 0xe6c   : > { %v1869_v60 = vadd.f32 1e-12, %v1867_v59 }
 0xe6d   : > { %v1866_v6 = vpop.xlane.xlu0 %1865 }
 0xe6e   : > { %2554 = vrsqrt.f32 %v1869_v60  ;;  %v1868_v61 = vmul.f32 0.03125, %v1866_v6 }
 0xe70   : > { %v1870_v63 = vadd.f32 1e-12, %v1868_v61 }
 0xe72   : > { %2556 = vrsqrt.f32 %v1870_v63 }
 0xe78   : > { %v2555_v0 = vpop.eup %2554 }
 0xe79   : > { %v1873_v41 = vmul.f32 %v2555_v0, %v1857_v52 }
 0xe7b   : > { %v1881_v1 = vmul.f32 %v2285_v39, %v1873_v41 }
 0xe7c   : > { %v2557_v45 = vpop.eup %2556 }
 0xe7d   : > { %v1874_v2 = vmul.f32 %v2557_v45, %v1858_v54  ;;  %v1889_v5 = vadd.f32 %v2286_v3, %v1881_v1 }
 0xe7f   : > { %v1882_v4 = vmul.f32 %v2285_v39, %v1874_v2  ;;  %v2297_v2 = vld [vmem:[%s675_s28] ss:$0 sm:$0xff] }
 0xe81   : > { %v1890_v7 = vadd.f32 %v2286_v3, %v1882_v4 }
 0xe83   : > { %v1891_v8 = vpack.c.bf16 %v1890_v7, %v1889_v5 }
 0xe85   : > { %2468 = vmatmul.mubr.msk.bf16.vlgmr.msra.gmra.mrb[36].mxu0 %vm760_vm2, %v1891_v8 }
 0xf58   : > { %v1952_v44 = vpop.f32.mrb[36].mxu0 }
 0xf59   : > { %v1953_v14 = vadd.f32 %v2287_v13, %v1952_v44  ;;  %v2469_v15 = vpop.f32.mrb[37].mxu0 }
 0xf5a   : > { %v1955_v16 = vpop.f32.mrb[38].mxu0 }
 0xf5b   : > { %v1961_v17 = vmul.f32 0.044715, %v1953_v14  ;;  %v1956_v18 = vadd.f32 %v2287_v13, %v1955_v16  ;;  %v2470_v19 = vpop.f32.mrb[39].mxu0  ;;  %v1959_v32 = vmul.f32 0.5, %v1953_v14 }
 0xf5d   : > { %v1963_v20 = vmul.f32 %v1961_v17, %v1953_v14  ;;  %v1962_v21 = vmul.f32 0.044715, %v1956_v18  ;;  %v1960_v35 = vmul.f32 0.5, %v1956_v18 }
 0xf5f   : > { %v1965_v22 = vmul.f32 %v1963_v20, %v1953_v14  ;;  %v1964_v23 = vmul.f32 %v1962_v21, %v1956_v18 }
 0xf61   : > { %v1967_v24 = vadd.f32 %v1965_v22, %v1953_v14  ;;  %v1966_v25 = vmul.f32 %v1964_v23, %v1956_v18 }
 0xf63   : > { %v1969_v31 = vmul.f32 0.7978846, %v1967_v24  ;;  %v1968_v26 = vadd.f32 %v1966_v25, %v1956_v18 }
 0xf65   : > { %2558 = vtanh.f32 %v1969_v31  ;;  %v1970_v27 = vmul.f32 0.7978846, %v1968_v26 }
 0xf67   : > { %2560 = vtanh.f32 %v1970_v27 }
 0xf6f   : > { %v2559_v28 = vpop.eup %2558 }
 0xf70   : > { %v1973_v29 = vadd.f32 1.0, %v2559_v28 }
 0xf71   : > { %v2561_v30 = vpop.eup %2560 }
 0xf72   : > { %v1974_v36 = vadd.f32 1.0, %v2561_v30  ;;  %v1975_v37 = vmul.f32 %v1973_v29, %v1959_v32 }
 0xf74   : > { %v1976_v38 = vmul.f32 %v1974_v36, %v1960_v35 }
 0xf76   : > { %v1977_v40 = vpack.c.bf16 %v1976_v38, %v1975_v37 }
 0xf78   : > { %2480 = vmatmul.mubr.msk.bf16.vlgmr.msra.gmra.mrb[36].mxu1 %vm2017_vm8, %v1977_v40 }
0x104b   : > { %v2055_v43 = vpop.f32.mrb[36].mxu1 }
0x104c   : > { %v2056_v46 = vadd.f32 %v2291_v42, %v2055_v43  ;;  %v2481_v47 = vpop.f32.mrb[37].mxu1 }
0x104d   : > { %v2058_v48 = vpop.f32.mrb[38].mxu1 }
0x104e   : > { %v2059_v49 = vadd.f32 %v2291_v42, %v2058_v48  ;;  %v2482_v50 = vpop.f32.mrb[39].mxu1  ;;  %v2062_v51 = vadd.f32 %v2056_v46, %v1889_v5  ;;  %v2298_v5 = vld [vmem:[%s678_s2] ss:$0 sm:$0xff] }
0x1050   : > { %v2066_v52 = vsel %vm760_vm2, %v2062_v51, 0.0  ;;  %v2063_v53 = vadd.f32 %v2059_v49, %v1890_v7 }
0x1051   : > { %2067 = vadd.xlane.f32.xlu1 %v2066_v52 }
0x1052   : > { %v2069_v54 = vsel %vm760_vm2, %v2063_v53, 0.0 }
0x1053   : > { %2070 = vadd.xlane.f32.xlu0 %v2069_v54 }
0x10de   : > { %v2068_v55 = vpop.xlane.xlu1 %2067 }
0x10df   : > { %v2072_v56 = vmul.f32 0.03125, %v2068_v55 }
0x10e0   : > { %v2071_v33 = vpop.xlane.xlu0 %2070 }
0x10e1   : > { %v2074_v57 = vsub.f32 %v2062_v51, %v2072_v56  ;;  %v2073_v34 = vmul.f32 0.03125, %v2071_v33 }
0x10e3   : > { %v2075_v62 = vsub.f32 %v2063_v53, %v2073_v34  ;;  %v2076_v58 = vmul.f32 %v2074_v57, %v2074_v57 }
0x10e5   : > { %v2078_v59 = vsel %vm760_vm2, %v2076_v58, 0.0  ;;  %v2077_v60 = vmul.f32 %v2075_v62, %v2075_v62 }
0x10e6   : > { %2079 = vadd.xlane.f32.xlu1 %v2078_v59 }
0x10e7   : > { %v2081_v6 = vsel %vm760_vm2, %v2077_v60, 0.0 }
0x10e8   : > { %2082 = vadd.xlane.f32.xlu0 %v2081_v6 }
0x1173   : > { %v2080_v61 = vpop.xlane.xlu1 %2079 }
0x1174   : > { %v2084_v63 = vmul.f32 0.03125, %v2080_v61 }
0x1175   : > { %v2083_v0 = vpop.xlane.xlu0 %2082 }
0x1176   : > { %v2086_v41 = vadd.f32 1e-12, %v2084_v63  ;;  %v2085_v39 = vmul.f32 0.03125, %v2083_v0 }
0x1178   : > { %2562 = vrsqrt.f32 %v2086_v41  ;;  %v2087_v45 = vadd.f32 1e-12, %v2085_v39 }
0x117a   : > { %2564 = vrsqrt.f32 %v2087_v45 }
0x1182   : > { %v2563_v1 = vpop.eup %2562 }
0x1183   : > { %v2090_v3 = vmul.f32 %v2563_v1, %v2074_v57 }
0x1184   : > { %v2565_v4 = vpop.eup %2564 }
0x1185   : > { %v2098_v7 = vmul.f32 %v2297_v2, %v2090_v3  ;;  %v2091_v8 = vmul.f32 %v2565_v4, %v2075_v62 }
0x1187   : > { %v2106_v9 = vadd.f32 %v2298_v5, %v2098_v7  ;;  %v2099_v10 = vmul.f32 %v2297_v2, %v2091_v8 }
0x1189   : > { %2108 = vst.msk [vmem:[%s3053_s27] sm:$0xff] %vm760_vm2, %v2106_v9  ;;  %v2107_v11 = vadd.f32 %v2298_v5, %v2099_v10 }
0x118b   : > { %2109 = vst.msk [vmem:[%s3053_s27 + $0x8] sm:$0xff] %vm760_vm2, %v2107_v11 }
0x118c PF: > { %s3060_s16 = sld [smem:[#allocation3_spill]] }
0x1192   : > { %s26_s21 = sadd.s32 1, %s3060_s16  }
0x1193   : > { %p23_p5 = scmp.ge.s32.totalorder %s26_s21, 4  }
0x1195   :  { %25 = sbr.rel (!%p23_p5) target bundleno = 7 (0x7), region = 147 }

</bundles_post_ra>
